<compile_context>
chip_gen: v6e
topology: v6e:2x2x1
jax: 0.10.0
libtpu: 0.0.40
codegen_flags: <defaults>
</compile_context>

<pallas_src>
import functools

import jax
import jax.numpy as jnp
from jax import lax
from jax.experimental import pallas as pl
from jax.experimental.pallas import tpu as pltpu


def _round_up(n, m):
    return ((n + m - 1) // m) * m


def _vmem_bytes(Tc, Bc, D, Hp, Dp):
    """Resident VMEM estimate for one grid step (incl. double-buffered blocks)."""
    f32, bf16 = 4, 2
    weights = (D * 4 * Hp + Hp * 4 * Hp + Hp * Dp) * bf16 + (4 * Hp + Dp) * f32
    io = 2 * (Tc * Bc * D * f32 + Tc * Bc * Dp * f32)        # x / o double buffers
    scratch = (2 * Bc * Hp + Tc * Bc * Hp + Tc * Bc * 4 * Hp) * f32
    return weights + io + scratch


def _pick_time_chunk(T, Bc, D, Hp, Dp, budget=36 * 1024 * 1024):
    """Largest time chunk (<=32) whose working set fits the VMEM budget."""
    tc = min(T, 32)
    while tc > 1 and _vmem_bytes(tc, Bc, D, Hp, Dp) > budget:
        tc = max(1, tc // 2)
    return tc


def lstm_chunk_kernel(x_ref, wih_ref, whh_ref, b_ref, wfc_ref, bfc_ref,
                      o_ref, h_sc, c_sc, hs_sc, xg_sc, *, Tc, Bc, Hp, unroll):
    """One (batch-chunk, time-chunk) grid step.

    x_ref   : (Tc*Bc, D)    f32   time-major input chunk
    wih_ref : (D, 4*Hp)     bf16  input->gates weight (gate order i,f,o,g)
    whh_ref : (Hp, 4*Hp)    bf16  hidden->gates weight
    b_ref   : (1, 4*Hp)     f32   combined bias (b_ih + b_hh)
    wfc_ref : (Hp, Dp)      bf16  FC weight
    bfc_ref : (1, Dp)       f32   FC bias
    o_ref   : (Tc*Bc, Dp)   f32   output chunk (lane-dense, Dp = mult of 128)
    h_sc/c_sc : (Bc, Hp)    f32   recurrent state, carried across time chunks
    hs_sc   : (Tc*Bc, Hp)   f32   per-chunk hidden states (hoisted FC input)
    xg_sc   : (Tc*Bc, 4Hp)  f32   per-chunk hoisted input projection
    """
    # Reset recurrent state at the start of each batch chunk's time loop.
    @pl.when(pl.program_id(1) == 0)
    def _():
        h_sc[...] = jnp.zeros_like(h_sc)
        c_sc[...] = jnp.zeros_like(c_sc)

    # ---- 1) Hoisted input projection for the whole chunk (one MXU matmul). --
    xg_sc[...] = (
        jnp.dot(x_ref[...].astype(jnp.bfloat16), wih_ref[...],
                preferred_element_type=jnp.float32)
        + b_ref[...]
    )

    # ---- 2) Serial recurrence: only h @ W_hh on the critical path. ----------
    def step(t, carry):
        row = pl.multiple_of(t * Bc, 8)           # Bc is a multiple of 8
        gates = xg_sc[pl.ds(row, Bc), :] + jnp.dot(
            h_sc[...].astype(jnp.bfloat16), whh_ref[...],
            preferred_element_type=jnp.float32)

        # Gate order (i, f, o, g): one wide sigmoid + one tanh.
        sig = jax.nn.sigmoid(gates[:, :3 * Hp])
        g_g = jnp.tanh(gates[:, 3 * Hp:])
        i_g = sig[:, 0 * Hp:1 * Hp]
        f_g = sig[:, 1 * Hp:2 * Hp]
        o_g = sig[:, 2 * Hp:3 * Hp]

        c_new = f_g * c_sc[...] + i_g * g_g
        h_new = o_g * jnp.tanh(c_new)

        c_sc[...] = c_new
        h_sc[...] = h_new
        hs_sc[pl.ds(row, Bc), :] = h_new
        return carry

    lax.fori_loop(0, Tc, step, 0, unroll=unroll)

    # ---- 3) Hoisted FC for the whole chunk (lane-dense Dp output). ----------
    o_ref[...] = (
        jnp.dot(hs_sc[...].astype(jnp.bfloat16), wfc_ref[...],
                preferred_element_type=jnp.float32)
        + bfc_ref[...]
    )


@jax.jit
def simple_lstm_forward(x, w_ih, w_hh, b_ih, b_hh, w_fc, b_fc):
    """x: (T, B, D) f32.  Weights in PyTorch shapes:
    w_ih (4H, D), w_hh (4H, H), b_ih/b_hh (4H,), w_fc (D, H), b_fc (D,)."""
    T, B, D = x.shape
    H = w_hh.shape[1]
    Hp = _round_up(H, 128)      # per-gate lane-aligned hidden width
    Dp = _round_up(D, 128)      # lane-dense FC output width

    # Batch-chunk "parallel" axis: 2 chunks for batch >= 16 (v7x dual-TC),
    # otherwise 1.  Each chunk is sublane-aligned.
    n_bc = 2 if B >= 16 else 1
    Bc = _round_up(-(-B // n_bc), 8)
    Bp = n_bc * Bc

    Tc = _pick_time_chunk(T, Bc, D, Hp, Dp)
    Tp = _round_up(T, Tc)
    n_tc = Tp // Tc

    # --- gate reorder (PyTorch i,f,g,o -> kernel i,f,o,g) + per-gate pad -----
    perm = jnp.array([0, 1, 3, 2])

    def pad_gates(w):                               # (4H, X) -> (4Hp, X)
        w4 = w.reshape(4, H, -1)[perm]
        w4 = jnp.pad(w4, ((0, 0), (0, Hp - H), (0, 0)))
        return w4.reshape(4 * Hp, -1)

    w_ih_t = pad_gates(w_ih).T.astype(jnp.bfloat16)                      # (D, 4Hp)
    w_hh_t = jnp.pad(pad_gates(w_hh),
                     ((0, 0), (0, Hp - H))).T.astype(jnp.bfloat16)       # (Hp, 4Hp)
    b2 = pad_gates((b_ih + b_hh)[:, None]).reshape(1, 4 * Hp)            # (1, 4Hp)
    w_fc_t = jnp.pad(w_fc, ((0, Dp - D),
                            (0, Hp - H))).T.astype(jnp.bfloat16)         # (Hp, Dp)
    b_fc2 = jnp.pad(b_fc, (0, Dp - D)).reshape(1, Dp)                    # (1, Dp)

    # --- pad batch/time; lay out x as (n_bc, Tp*Bc, D), time-major per chunk -
    x_p = jnp.pad(x, ((0, Tp - T), (0, Bp - B), (0, 0)))                 # (Tp,Bp,D)
    x_r = (x_p.reshape(Tp, n_bc, Bc, D)
              .transpose(1, 0, 2, 3)
              .reshape(n_bc, Tp * Bc, D))

    # Unroll capped by live-vreg pressure of the gate tile.
    vregs_per_step = max(1, (Bc // 8) * ((4 * Hp) // 128))
    unroll = max(1, min(8, 48 // vregs_per_step, Tc))

    vmem_limit = int(min(max(_vmem_bytes(Tc, Bc, D, Hp, Dp) * 1.5,
                             20 * 1024 * 1024), 64 * 1024 * 1024))

    kernel = functools.partial(lstm_chunk_kernel, Tc=Tc, Bc=Bc, Hp=Hp,
                               unroll=unroll)

    out = pl.pallas_call(
        kernel,
        out_shape=jax.ShapeDtypeStruct((n_bc, Tp * Bc, Dp), jnp.float32),
        grid=(n_bc, n_tc),
        in_specs=[
            pl.BlockSpec((None, Tc * Bc, D), lambda b, t: (b, t, 0)),    # x chunk
            pl.BlockSpec((D, 4 * Hp), lambda b, t: (0, 0)),              # W_ih^T
            pl.BlockSpec((Hp, 4 * Hp), lambda b, t: (0, 0)),             # W_hh^T
            pl.BlockSpec((1, 4 * Hp), lambda b, t: (0, 0)),              # bias
            pl.BlockSpec((Hp, Dp), lambda b, t: (0, 0)),                 # W_fc^T
            pl.BlockSpec((1, Dp), lambda b, t: (0, 0)),                  # b_fc
        ],
        out_specs=pl.BlockSpec((None, Tc * Bc, Dp), lambda b, t: (b, t, 0)),
        scratch_shapes=[
            pltpu.VMEM((Bc, Hp), jnp.float32),            # h state (carried)
            pltpu.VMEM((Bc, Hp), jnp.float32),            # c state (carried)
            pltpu.VMEM((Tc * Bc, Hp), jnp.float32),       # chunk hidden states
            pltpu.VMEM((Tc * Bc, 4 * Hp), jnp.float32),   # chunk x-projection
        ],
        compiler_params=pltpu.CompilerParams(
            dimension_semantics=("parallel", "arbitrary"),
            vmem_limit_bytes=vmem_limit),
    )(x_r, w_ih_t, w_hh_t, b2, w_fc_t, b_fc2)

    out = (out.reshape(n_bc, Tp, Bc, Dp)
              .transpose(1, 0, 2, 3)
              .reshape(Tp, Bp, Dp))
    return out[:T, :B, :D]


def reference_forward(x, w_ih, w_hh, b_ih, b_hh, w_fc, b_fc):
    """Pure-JAX f32 reference (lax.scan LSTM + Linear) for correctness checking."""
    T, B, D = x.shape
    H = w_hh.shape[1]
    h0 = jnp.zeros((B, H), jnp.float32)
    c0 = jnp.zeros((B, H), jnp.float32)
    b = (b_ih + b_hh)[None, :]

    def step(carry, x_t):
        h, c = carry
        gates = x_t @ w_ih.T + h @ w_hh.T + b
        i = jax.nn.sigmoid(gates[:, 0 * H:1 * H])
        f = jax.nn.sigmoid(gates[:, 1 * H:2 * H])
        g = jnp.tanh(gates[:, 2 * H:3 * H])
        o = jax.nn.sigmoid(gates[:, 3 * H:4 * H])
        c = f * c + i * g
        h = o * jnp.tanh(c)
        return (h, c), h

    _, hs = jax.lax.scan(step, (h0, c0), x)
    return hs @ w_fc.T + b_fc[None, :]


if __name__ == "__main__":
    # Small shapes consistent with the module: single-layer LSTM + Linear back
    # to input_dim.
    SEQ, BATCH, INPUT_DIM, HIDDEN_DIM = 8, 4, 16, 32

    key = jax.random.PRNGKey(0)
    k_x, k1, k2, k3, k4, k5, k6 = jax.random.split(key, 7)

    bound = 1.0 / jnp.sqrt(HIDDEN_DIM)

    # PyTorch param shapes: weight_ih_l0 (4H, D), weight_hh_l0 (4H, H),
    # bias_ih_l0 (4H,), bias_hh_l0 (4H,), fc.weight (D, H), fc.bias (D,).
    w_ih = jax.random.uniform(k1, (4 * HIDDEN_DIM, INPUT_DIM),
                              jnp.float32, -bound, bound)
    w_hh = jax.random.uniform(k2, (4 * HIDDEN_DIM, HIDDEN_DIM),
                              jnp.float32, -bound, bound)
    b_ih = jax.random.uniform(k3, (4 * HIDDEN_DIM,), jnp.float32, -bound, bound)
    b_hh = jax.random.uniform(k4, (4 * HIDDEN_DIM,), jnp.float32, -bound, bound)
    w_fc = jax.random.uniform(k5, (INPUT_DIM, HIDDEN_DIM),
                              jnp.float32, -bound, bound)
    b_fc = jax.random.uniform(k6, (INPUT_DIM,), jnp.float32, -bound, bound)

    x = jax.random.normal(k_x, (SEQ, BATCH, INPUT_DIM), jnp.float32)

    out = simple_lstm_forward(x, w_ih, w_hh, b_ih, b_hh, w_fc, b_fc)
    out = jax.block_until_ready(out)

    ref = reference_forward(x, w_ih, w_hh, b_ih, b_hh, w_fc, b_fc)
    ref = jax.block_until_ready(ref)

    assert out.shape == (SEQ, BATCH, INPUT_DIM)
    # bf16 MXU operands with f32 accumulation -> loosened tolerance vs f32 ref.
    assert jnp.allclose(out, ref, atol=3e-2, rtol=3e-2), \
        f"max err {jnp.max(jnp.abs(out - ref))}"

    print("KERNEL_OK")
</pallas_src>

<mosaic_0001>
module attributes {stable_mosaic.version = 11 : i64} {
  func.func @lstm_chunk_kernel(%arg0: i32, %arg1: i32, %arg2: memref<1x64x16xf32, #tpu.memory_space<vmem>>, %arg3: memref<16x512xbf16, #tpu.memory_space<vmem>>, %arg4: memref<128x512xbf16, #tpu.memory_space<vmem>>, %arg5: memref<1x512xf32, #tpu.memory_space<vmem>>, %arg6: memref<128x128xbf16, #tpu.memory_space<vmem>>, %arg7: memref<1x128xf32, #tpu.memory_space<vmem>>, %arg8: memref<1x64x128xf32, #tpu.memory_space<vmem>>, %arg9: memref<8x128xf32, #tpu.memory_space<vmem>>, %arg10: memref<8x128xf32, #tpu.memory_space<vmem>>, %arg11: memref<64x128xf32, #tpu.memory_space<vmem>>, %arg12: memref<64x512xf32, #tpu.memory_space<vmem>>) attributes {dimension_semantics = [#tpu.dimension_semantics<parallel>, #tpu.dimension_semantics<arbitrary>], iteration_bounds = array<i64: 1, 1>, scalar_prefetch = 0 : i64, scratch_operands = 4 : i64, tpu.core_type = #tpu.core_type<tc>, window_params = [{transform_indices = @transform_0, window_bounds = array<i64: 1, 64, 16>}, {pipeline_mode = #tpu.pipeline_mode<synchronous>, transform_indices = @transform_1, window_bounds = array<i64: 16, 512>}, {pipeline_mode = #tpu.pipeline_mode<synchronous>, transform_indices = @transform_2, window_bounds = array<i64: 128, 512>}, {pipeline_mode = #tpu.pipeline_mode<synchronous>, transform_indices = @transform_3, window_bounds = array<i64: 1, 512>}, {pipeline_mode = #tpu.pipeline_mode<synchronous>, transform_indices = @transform_4, window_bounds = array<i64: 128, 128>}, {pipeline_mode = #tpu.pipeline_mode<synchronous>, transform_indices = @transform_5, window_bounds = array<i64: 1, 128>}, {transform_indices = @transform_6, window_bounds = array<i64: 1, 64, 128>}]} {
    %c0_i32 = arith.constant 0 : i32
    %0 = arith.cmpi eq, %arg1, %c0_i32 : i32
    %1 = arith.extui %0 : i1 to i32
    %c0_i32_0 = arith.constant 0 : i32
    %2 = arith.cmpi ne, %1, %c0_i32_0 : i32
    scf.if %2 {
      %cst_140 = arith.constant 0.000000e+00 : f32
      %262 = vector.broadcast %cst_140 : f32 to vector<8x128xf32>
      %c0_141 = arith.constant 0 : index
      %c0_142 = arith.constant 0 : index
      %263 = vector.load %arg9[%c0_141, %c0_142] : memref<8x128xf32, #tpu.memory_space<vmem>>, vector<8x128xf32>
      tpu.vector_store %arg9[%c0_141, %c0_142], %262 {strides = array<i32>} : memref<8x128xf32, #tpu.memory_space<vmem>>, vector<8x128xf32>,
      %cst_143 = arith.constant 0.000000e+00 : f32
      %264 = vector.broadcast %cst_143 : f32 to vector<8x128xf32>
      %c0_144 = arith.constant 0 : index
      %c0_145 = arith.constant 0 : index
      %265 = vector.load %arg10[%c0_144, %c0_145] : memref<8x128xf32, #tpu.memory_space<vmem>>, vector<8x128xf32>
      tpu.vector_store %arg10[%c0_144, %c0_145], %264 {strides = array<i32>} : memref<8x128xf32, #tpu.memory_space<vmem>>, vector<8x128xf32>,
    } else {
    }
    %c0 = arith.constant 0 : index
    %c0_1 = arith.constant 0 : index
    %c0_2 = arith.constant 0 : index
    %3 = vector.load %arg2[%c0, %c0_1, %c0_2] : memref<1x64x16xf32, #tpu.memory_space<vmem>>, vector<1x64x16xf32>
    %4 = vector.shape_cast %3 : vector<1x64x16xf32> to vector<64x16xf32>
    %5 = arith.truncf %4 : vector<64x16xf32> to vector<64x16xbf16>
    %c0_3 = arith.constant 0 : index
    %c0_4 = arith.constant 0 : index
    %6 = vector.load %arg3[%c0_3, %c0_4] : memref<16x512xbf16, #tpu.memory_space<vmem>>, vector<16x512xbf16>
    %cst = arith.constant dense<0.000000e+00> : vector<64x512xf32>
    %7 = tpu.matmul %5, %6, %cst {dimension_numbers = #tpu.dot_dimension_numbers<[1], [0], [0], [1], [0, 0, 1, 1], [], []>} : vector<64x16xbf16>, vector<16x512xbf16>, vector<64x512xf32> -> vector<64x512xf32>
    %c0_5 = arith.constant 0 : index
    %c0_6 = arith.constant 0 : index
    %8 = vector.load %arg5[%c0_5, %c0_6] : memref<1x512xf32, #tpu.memory_space<vmem>>, vector<1x512xf32>
    %9 = vector.broadcast %8 : vector<1x512xf32> to vector<64x512xf32>
    %10 = arith.addf %7, %9 : vector<64x512xf32>
    %c0_7 = arith.constant 0 : index
    %c0_8 = arith.constant 0 : index
    %11 = vector.load %arg12[%c0_7, %c0_8] : memref<64x512xf32, #tpu.memory_space<vmem>>, vector<64x512xf32>
    tpu.vector_store %arg12[%c0_7, %c0_8], %10 {strides = array<i32>} : memref<64x512xf32, #tpu.memory_space<vmem>>, vector<64x512xf32>,
    %c0_i32_9 = arith.constant 0 : i32
    %c8_i32 = arith.constant 8 : i32
    %12 = arith.muli %c0_i32_9, %c8_i32 : i32
    %13 = tpu.assume_multiple %12, 8 : i32
    %14 = arith.index_cast %13 : i32 to index
    %c0_10 = arith.constant 0 : index
    %15 = vector.load %arg12[%14, %c0_10] : memref<64x512xf32, #tpu.memory_space<vmem>>, vector<8x512xf32>
    %c0_11 = arith.constant 0 : index
    %c0_12 = arith.constant 0 : index
    %16 = vector.load %arg9[%c0_11, %c0_12] : memref<8x128xf32, #tpu.memory_space<vmem>>, vector<8x128xf32>
    %17 = arith.truncf %16 : vector<8x128xf32> to vector<8x128xbf16>
    %c0_13 = arith.constant 0 : index
    %c0_14 = arith.constant 0 : index
    %18 = vector.load %arg4[%c0_13, %c0_14] : memref<128x512xbf16, #tpu.memory_space<vmem>>, vector<128x512xbf16>
    %cst_15 = arith.constant dense<0.000000e+00> : vector<8x512xf32>
    %19 = tpu.matmul %17, %18, %cst_15 {dimension_numbers = #tpu.dot_dimension_numbers<[1], [0], [0], [1], [0, 0, 1, 1], [], []>} : vector<8x128xbf16>, vector<128x512xbf16>, vector<8x512xf32> -> vector<8x512xf32>
    %20 = arith.addf %15, %19 : vector<8x512xf32>
    %21 = vector.extract_strided_slice %20 {offsets = [0, 0], sizes = [8, 384], strides = [1, 1]} : vector<8x512xf32> to vector<8x384xf32>
    %22 = arith.negf %21 : vector<8x384xf32>
    %23 = math.exp %22 : vector<8x384xf32>
    %cst_16 = arith.constant 1.000000e+00 : f32
    %24 = vector.broadcast %cst_16 : f32 to vector<8x384xf32>
    %25 = arith.addf %24, %23 : vector<8x384xf32>
    %26 = arith.divf %24, %25 : vector<8x384xf32>
    %27 = vector.extract_strided_slice %20 {offsets = [0, 384], sizes = [8, 128], strides = [1, 1]} : vector<8x512xf32> to vector<8x128xf32>
    %28 = math.tanh %27 : vector<8x128xf32>
    %29 = vector.extract_strided_slice %26 {offsets = [0, 0], sizes = [8, 128], strides = [1, 1]} : vector<8x384xf32> to vector<8x128xf32>
    %30 = vector.extract_strided_slice %26 {offsets = [0, 128], sizes = [8, 128], strides = [1, 1]} : vector<8x384xf32> to vector<8x128xf32>
    %31 = vector.extract_strided_slice %26 {offsets = [0, 256], sizes = [8, 128], strides = [1, 1]} : vector<8x384xf32> to vector<8x128xf32>
    %c0_17 = arith.constant 0 : index
    %c0_18 = arith.constant 0 : index
    %32 = vector.load %arg10[%c0_17, %c0_18] : memref<8x128xf32, #tpu.memory_space<vmem>>, vector<8x128xf32>
    %33 = arith.mulf %30, %32 : vector<8x128xf32>
    %34 = arith.mulf %29, %28 : vector<8x128xf32>
    %35 = arith.addf %33, %34 : vector<8x128xf32>
    %36 = math.tanh %35 : vector<8x128xf32>
    %37 = arith.mulf %31, %36 : vector<8x128xf32>
    %c0_19 = arith.constant 0 : index
    %c0_20 = arith.constant 0 : index
    %38 = vector.load %arg10[%c0_19, %c0_20] : memref<8x128xf32, #tpu.memory_space<vmem>>, vector<8x128xf32>
    tpu.vector_store %arg10[%c0_19, %c0_20], %35 {strides = array<i32>} : memref<8x128xf32, #tpu.memory_space<vmem>>, vector<8x128xf32>,
    %c0_21 = arith.constant 0 : index
    %c0_22 = arith.constant 0 : index
    %39 = vector.load %arg9[%c0_21, %c0_22] : memref<8x128xf32, #tpu.memory_space<vmem>>, vector<8x128xf32>
    tpu.vector_store %arg9[%c0_21, %c0_22], %37 {strides = array<i32>} : memref<8x128xf32, #tpu.memory_space<vmem>>, vector<8x128xf32>,
    %40 = arith.index_cast %13 : i32 to index
    %c0_23 = arith.constant 0 : index
    %41 = vector.load %arg11[%40, %c0_23] : memref<64x128xf32, #tpu.memory_space<vmem>>, vector<8x128xf32>
    tpu.vector_store %arg11[%40, %c0_23], %37 {strides = array<i32>} : memref<64x128xf32, #tpu.memory_space<vmem>>, vector<8x128xf32>,
    %c1_i32 = arith.constant 1 : i32
    %c8_i32_24 = arith.constant 8 : i32
    %42 = arith.muli %c1_i32, %c8_i32_24 : i32
    %43 = tpu.assume_multiple %42, 8 : i32
    %44 = arith.index_cast %43 : i32 to index
    %c0_25 = arith.constant 0 : index
    %45 = vector.load %arg12[%44, %c0_25] : memref<64x512xf32, #tpu.memory_space<vmem>>, vector<8x512xf32>
    %c0_26 = arith.constant 0 : index
    %c0_27 = arith.constant 0 : index
    %46 = vector.load %arg9[%c0_26, %c0_27] : memref<8x128xf32, #tpu.memory_space<vmem>>, vector<8x128xf32>
    %47 = arith.truncf %46 : vector<8x128xf32> to vector<8x128xbf16>
    %c0_28 = arith.constant 0 : index
    %c0_29 = arith.constant 0 : index
    %48 = vector.load %arg4[%c0_28, %c0_29] : memref<128x512xbf16, #tpu.memory_space<vmem>>, vector<128x512xbf16>
    %cst_30 = arith.constant dense<0.000000e+00> : vector<8x512xf32>
    %49 = tpu.matmul %47, %48, %cst_30 {dimension_numbers = #tpu.dot_dimension_numbers<[1], [0], [0], [1], [0, 0, 1, 1], [], []>} : vector<8x128xbf16>, vector<128x512xbf16>, vector<8x512xf32> -> vector<8x512xf32>
    %50 = arith.addf %45, %49 : vector<8x512xf32>
    %51 = vector.extract_strided_slice %50 {offsets = [0, 0], sizes = [8, 384], strides = [1, 1]} : vector<8x512xf32> to vector<8x384xf32>
    %52 = arith.negf %51 : vector<8x384xf32>
    %53 = math.exp %52 : vector<8x384xf32>
    %cst_31 = arith.constant 1.000000e+00 : f32
    %54 = vector.broadcast %cst_31 : f32 to vector<8x384xf32>
    %55 = arith.addf %54, %53 : vector<8x384xf32>
    %56 = arith.divf %54, %55 : vector<8x384xf32>
    %57 = vector.extract_strided_slice %50 {offsets = [0, 384], sizes = [8, 128], strides = [1, 1]} : vector<8x512xf32> to vector<8x128xf32>
    %58 = math.tanh %57 : vector<8x128xf32>
    %59 = vector.extract_strided_slice %56 {offsets = [0, 0], sizes = [8, 128], strides = [1, 1]} : vector<8x384xf32> to vector<8x128xf32>
    %60 = vector.extract_strided_slice %56 {offsets = [0, 128], sizes = [8, 128], strides = [1, 1]} : vector<8x384xf32> to vector<8x128xf32>
    %61 = vector.extract_strided_slice %56 {offsets = [0, 256], sizes = [8, 128], strides = [1, 1]} : vector<8x384xf32> to vector<8x128xf32>
    %c0_32 = arith.constant 0 : index
    %c0_33 = arith.constant 0 : index
    %62 = vector.load %arg10[%c0_32, %c0_33] : memref<8x128xf32, #tpu.memory_space<vmem>>, vector<8x128xf32>
    %63 = arith.mulf %60, %62 : vector<8x128xf32>
    %64 = arith.mulf %59, %58 : vector<8x128xf32>
    %65 = arith.addf %63, %64 : vector<8x128xf32>
    %66 = math.tanh %65 : vector<8x128xf32>
    %67 = arith.mulf %61, %66 : vector<8x128xf32>
    %c0_34 = arith.constant 0 : index
    %c0_35 = arith.constant 0 : index
    %68 = vector.load %arg10[%c0_34, %c0_35] : memref<8x128xf32, #tpu.memory_space<vmem>>, vector<8x128xf32>
    tpu.vector_store %arg10[%c0_34, %c0_35], %65 {strides = array<i32>} : memref<8x128xf32, #tpu.memory_space<vmem>>, vector<8x128xf32>,
    %c0_36 = arith.constant 0 : index
    %c0_37 = arith.constant 0 : index
    %69 = vector.load %arg9[%c0_36, %c0_37] : memref<8x128xf32, #tpu.memory_space<vmem>>, vector<8x128xf32>
    tpu.vector_store %arg9[%c0_36, %c0_37], %67 {strides = array<i32>} : memref<8x128xf32, #tpu.memory_space<vmem>>, vector<8x128xf32>,
    %70 = arith.index_cast %43 : i32 to index
    %c0_38 = arith.constant 0 : index
    %71 = vector.load %arg11[%70, %c0_38] : memref<64x128xf32, #tpu.memory_space<vmem>>, vector<8x128xf32>
    tpu.vector_store %arg11[%70, %c0_38], %67 {strides = array<i32>} : memref<64x128xf32, #tpu.memory_space<vmem>>, vector<8x128xf32>,
    %c2_i32 = arith.constant 2 : i32
    %c8_i32_39 = arith.constant 8 : i32
    %72 = arith.muli %c2_i32, %c8_i32_39 : i32
    %73 = tpu.assume_multiple %72, 8 : i32
    %74 = arith.index_cast %73 : i32 to index
    %c0_40 = arith.constant 0 : index
    %75 = vector.load %arg12[%74, %c0_40] : memref<64x512xf32, #tpu.memory_space<vmem>>, vector<8x512xf32>
    %c0_41 = arith.constant 0 : index
    %c0_42 = arith.constant 0 : index
    %76 = vector.load %arg9[%c0_41, %c0_42] : memref<8x128xf32, #tpu.memory_space<vmem>>, vector<8x128xf32>
    %77 = arith.truncf %76 : vector<8x128xf32> to vector<8x128xbf16>
    %c0_43 = arith.constant 0 : index
    %c0_44 = arith.constant 0 : index
    %78 = vector.load %arg4[%c0_43, %c0_44] : memref<128x512xbf16, #tpu.memory_space<vmem>>, vector<128x512xbf16>
    %cst_45 = arith.constant dense<0.000000e+00> : vector<8x512xf32>
    %79 = tpu.matmul %77, %78, %cst_45 {dimension_numbers = #tpu.dot_dimension_numbers<[1], [0], [0], [1], [0, 0, 1, 1], [], []>} : vector<8x128xbf16>, vector<128x512xbf16>, vector<8x512xf32> -> vector<8x512xf32>
    %80 = arith.addf %75, %79 : vector<8x512xf32>
    %81 = vector.extract_strided_slice %80 {offsets = [0, 0], sizes = [8, 384], strides = [1, 1]} : vector<8x512xf32> to vector<8x384xf32>
    %82 = arith.negf %81 : vector<8x384xf32>
    %83 = math.exp %82 : vector<8x384xf32>
    %cst_46 = arith.constant 1.000000e+00 : f32
    %84 = vector.broadcast %cst_46 : f32 to vector<8x384xf32>
    %85 = arith.addf %84, %83 : vector<8x384xf32>
    %86 = arith.divf %84, %85 : vector<8x384xf32>
    %87 = vector.extract_strided_slice %80 {offsets = [0, 384], sizes = [8, 128], strides = [1, 1]} : vector<8x512xf32> to vector<8x128xf32>
    %88 = math.tanh %87 : vector<8x128xf32>
    %89 = vector.extract_strided_slice %86 {offsets = [0, 0], sizes = [8, 128], strides = [1, 1]} : vector<8x384xf32> to vector<8x128xf32>
    %90 = vector.extract_strided_slice %86 {offsets = [0, 128], sizes = [8, 128], strides = [1, 1]} : vector<8x384xf32> to vector<8x128xf32>
    %91 = vector.extract_strided_slice %86 {offsets = [0, 256], sizes = [8, 128], strides = [1, 1]} : vector<8x384xf32> to vector<8x128xf32>
    %c0_47 = arith.constant 0 : index
    %c0_48 = arith.constant 0 : index
    %92 = vector.load %arg10[%c0_47, %c0_48] : memref<8x128xf32, #tpu.memory_space<vmem>>, vector<8x128xf32>
    %93 = arith.mulf %90, %92 : vector<8x128xf32>
    %94 = arith.mulf %89, %88 : vector<8x128xf32>
    %95 = arith.addf %93, %94 : vector<8x128xf32>
    %96 = math.tanh %95 : vector<8x128xf32>
    %97 = arith.mulf %91, %96 : vector<8x128xf32>
    %c0_49 = arith.constant 0 : index
    %c0_50 = arith.constant 0 : index
    %98 = vector.load %arg10[%c0_49, %c0_50] : memref<8x128xf32, #tpu.memory_space<vmem>>, vector<8x128xf32>
    tpu.vector_store %arg10[%c0_49, %c0_50], %95 {strides = array<i32>} : memref<8x128xf32, #tpu.memory_space<vmem>>, vector<8x128xf32>,
    %c0_51 = arith.constant 0 : index
    %c0_52 = arith.constant 0 : index
    %99 = vector.load %arg9[%c0_51, %c0_52] : memref<8x128xf32, #tpu.memory_space<vmem>>, vector<8x128xf32>
    tpu.vector_store %arg9[%c0_51, %c0_52], %97 {strides = array<i32>} : memref<8x128xf32, #tpu.memory_space<vmem>>, vector<8x128xf32>,
    %100 = arith.index_cast %73 : i32 to index
    %c0_53 = arith.constant 0 : index
    %101 = vector.load %arg11[%100, %c0_53] : memref<64x128xf32, #tpu.memory_space<vmem>>, vector<8x128xf32>
    tpu.vector_store %arg11[%100, %c0_53], %97 {strides = array<i32>} : memref<64x128xf32, #tpu.memory_space<vmem>>, vector<8x128xf32>,
    %c3_i32 = arith.constant 3 : i32
    %c8_i32_54 = arith.constant 8 : i32
    %102 = arith.muli %c3_i32, %c8_i32_54 : i32
    %103 = tpu.assume_multiple %102, 8 : i32
    %104 = arith.index_cast %103 : i32 to index
    %c0_55 = arith.constant 0 : index
    %105 = vector.load %arg12[%104, %c0_55] : memref<64x512xf32, #tpu.memory_space<vmem>>, vector<8x512xf32>
    %c0_56 = arith.constant 0 : index
    %c0_57 = arith.constant 0 : index
    %106 = vector.load %arg9[%c0_56, %c0_57] : memref<8x128xf32, #tpu.memory_space<vmem>>, vector<8x128xf32>
    %107 = arith.truncf %106 : vector<8x128xf32> to vector<8x128xbf16>
    %c0_58 = arith.constant 0 : index
    %c0_59 = arith.constant 0 : index
    %108 = vector.load %arg4[%c0_58, %c0_59] : memref<128x512xbf16, #tpu.memory_space<vmem>>, vector<128x512xbf16>
    %cst_60 = arith.constant dense<0.000000e+00> : vector<8x512xf32>
    %109 = tpu.matmul %107, %108, %cst_60 {dimension_numbers = #tpu.dot_dimension_numbers<[1], [0], [0], [1], [0, 0, 1, 1], [], []>} : vector<8x128xbf16>, vector<128x512xbf16>, vector<8x512xf32> -> vector<8x512xf32>
    %110 = arith.addf %105, %109 : vector<8x512xf32>
    %111 = vector.extract_strided_slice %110 {offsets = [0, 0], sizes = [8, 384], strides = [1, 1]} : vector<8x512xf32> to vector<8x384xf32>
    %112 = arith.negf %111 : vector<8x384xf32>
    %113 = math.exp %112 : vector<8x384xf32>
    %cst_61 = arith.constant 1.000000e+00 : f32
    %114 = vector.broadcast %cst_61 : f32 to vector<8x384xf32>
    %115 = arith.addf %114, %113 : vector<8x384xf32>
    %116 = arith.divf %114, %115 : vector<8x384xf32>
    %117 = vector.extract_strided_slice %110 {offsets = [0, 384], sizes = [8, 128], strides = [1, 1]} : vector<8x512xf32> to vector<8x128xf32>
    %118 = math.tanh %117 : vector<8x128xf32>
    %119 = vector.extract_strided_slice %116 {offsets = [0, 0], sizes = [8, 128], strides = [1, 1]} : vector<8x384xf32> to vector<8x128xf32>
    %120 = vector.extract_strided_slice %116 {offsets = [0, 128], sizes = [8, 128], strides = [1, 1]} : vector<8x384xf32> to vector<8x128xf32>
    %121 = vector.extract_strided_slice %116 {offsets = [0, 256], sizes = [8, 128], strides = [1, 1]} : vector<8x384xf32> to vector<8x128xf32>
    %c0_62 = arith.constant 0 : index
    %c0_63 = arith.constant 0 : index
    %122 = vector.load %arg10[%c0_62, %c0_63] : memref<8x128xf32, #tpu.memory_space<vmem>>, vector<8x128xf32>
    %123 = arith.mulf %120, %122 : vector<8x128xf32>
    %124 = arith.mulf %119, %118 : vector<8x128xf32>
    %125 = arith.addf %123, %124 : vector<8x128xf32>
    %126 = math.tanh %125 : vector<8x128xf32>
    %127 = arith.mulf %121, %126 : vector<8x128xf32>
    %c0_64 = arith.constant 0 : index
    %c0_65 = arith.constant 0 : index
    %128 = vector.load %arg10[%c0_64, %c0_65] : memref<8x128xf32, #tpu.memory_space<vmem>>, vector<8x128xf32>
    tpu.vector_store %arg10[%c0_64, %c0_65], %125 {strides = array<i32>} : memref<8x128xf32, #tpu.memory_space<vmem>>, vector<8x128xf32>,
    %c0_66 = arith.constant 0 : index
    %c0_67 = arith.constant 0 : index
    %129 = vector.load %arg9[%c0_66, %c0_67] : memref<8x128xf32, #tpu.memory_space<vmem>>, vector<8x128xf32>
    tpu.vector_store %arg9[%c0_66, %c0_67], %127 {strides = array<i32>} : memref<8x128xf32, #tpu.memory_space<vmem>>, vector<8x128xf32>,
    %130 = arith.index_cast %103 : i32 to index
    %c0_68 = arith.constant 0 : index
    %131 = vector.load %arg11[%130, %c0_68] : memref<64x128xf32, #tpu.memory_space<vmem>>, vector<8x128xf32>
    tpu.vector_store %arg11[%130, %c0_68], %127 {strides = array<i32>} : memref<64x128xf32, #tpu.memory_space<vmem>>, vector<8x128xf32>,
    %c4_i32 = arith.constant 4 : i32
    %c8_i32_69 = arith.constant 8 : i32
    %132 = arith.muli %c4_i32, %c8_i32_69 : i32
    %133 = tpu.assume_multiple %132, 8 : i32
    %134 = arith.index_cast %133 : i32 to index
    %c0_70 = arith.constant 0 : index
    %135 = vector.load %arg12[%134, %c0_70] : memref<64x512xf32, #tpu.memory_space<vmem>>, vector<8x512xf32>
    %c0_71 = arith.constant 0 : index
    %c0_72 = arith.constant 0 : index
    %136 = vector.load %arg9[%c0_71, %c0_72] : memref<8x128xf32, #tpu.memory_space<vmem>>, vector<8x128xf32>
    %137 = arith.truncf %136 : vector<8x128xf32> to vector<8x128xbf16>
    %c0_73 = arith.constant 0 : index
    %c0_74 = arith.constant 0 : index
    %138 = vector.load %arg4[%c0_73, %c0_74] : memref<128x512xbf16, #tpu.memory_space<vmem>>, vector<128x512xbf16>
    %cst_75 = arith.constant dense<0.000000e+00> : vector<8x512xf32>
    %139 = tpu.matmul %137, %138, %cst_75 {dimension_numbers = #tpu.dot_dimension_numbers<[1], [0], [0], [1], [0, 0, 1, 1], [], []>} : vector<8x128xbf16>, vector<128x512xbf16>, vector<8x512xf32> -> vector<8x512xf32>
    %140 = arith.addf %135, %139 : vector<8x512xf32>
    %141 = vector.extract_strided_slice %140 {offsets = [0, 0], sizes = [8, 384], strides = [1, 1]} : vector<8x512xf32> to vector<8x384xf32>
    %142 = arith.negf %141 : vector<8x384xf32>
    %143 = math.exp %142 : vector<8x384xf32>
    %cst_76 = arith.constant 1.000000e+00 : f32
    %144 = vector.broadcast %cst_76 : f32 to vector<8x384xf32>
    %145 = arith.addf %144, %143 : vector<8x384xf32>
    %146 = arith.divf %144, %145 : vector<8x384xf32>
    %147 = vector.extract_strided_slice %140 {offsets = [0, 384], sizes = [8, 128], strides = [1, 1]} : vector<8x512xf32> to vector<8x128xf32>
    %148 = math.tanh %147 : vector<8x128xf32>
    %149 = vector.extract_strided_slice %146 {offsets = [0, 0], sizes = [8, 128], strides = [1, 1]} : vector<8x384xf32> to vector<8x128xf32>
    %150 = vector.extract_strided_slice %146 {offsets = [0, 128], sizes = [8, 128], strides = [1, 1]} : vector<8x384xf32> to vector<8x128xf32>
    %151 = vector.extract_strided_slice %146 {offsets = [0, 256], sizes = [8, 128], strides = [1, 1]} : vector<8x384xf32> to vector<8x128xf32>
    %c0_77 = arith.constant 0 : index
    %c0_78 = arith.constant 0 : index
    %152 = vector.load %arg10[%c0_77, %c0_78] : memref<8x128xf32, #tpu.memory_space<vmem>>, vector<8x128xf32>
    %153 = arith.mulf %150, %152 : vector<8x128xf32>
    %154 = arith.mulf %149, %148 : vector<8x128xf32>
    %155 = arith.addf %153, %154 : vector<8x128xf32>
    %156 = math.tanh %155 : vector<8x128xf32>
    %157 = arith.mulf %151, %156 : vector<8x128xf32>
    %c0_79 = arith.constant 0 : index
    %c0_80 = arith.constant 0 : index
    %158 = vector.load %arg10[%c0_79, %c0_80] : memref<8x128xf32, #tpu.memory_space<vmem>>, vector<8x128xf32>
    tpu.vector_store %arg10[%c0_79, %c0_80], %155 {strides = array<i32>} : memref<8x128xf32, #tpu.memory_space<vmem>>, vector<8x128xf32>,
    %c0_81 = arith.constant 0 : index
    %c0_82 = arith.constant 0 : index
    %159 = vector.load %arg9[%c0_81, %c0_82] : memref<8x128xf32, #tpu.memory_space<vmem>>, vector<8x128xf32>
    tpu.vector_store %arg9[%c0_81, %c0_82], %157 {strides = array<i32>} : memref<8x128xf32, #tpu.memory_space<vmem>>, vector<8x128xf32>,
    %160 = arith.index_cast %133 : i32 to index
    %c0_83 = arith.constant 0 : index
    %161 = vector.load %arg11[%160, %c0_83] : memref<64x128xf32, #tpu.memory_space<vmem>>, vector<8x128xf32>
    tpu.vector_store %arg11[%160, %c0_83], %157 {strides = array<i32>} : memref<64x128xf32, #tpu.memory_space<vmem>>, vector<8x128xf32>,
    %c5_i32 = arith.constant 5 : i32
    %c8_i32_84 = arith.constant 8 : i32
    %162 = arith.muli %c5_i32, %c8_i32_84 : i32
    %163 = tpu.assume_multiple %162, 8 : i32
    %164 = arith.index_cast %163 : i32 to index
    %c0_85 = arith.constant 0 : index
    %165 = vector.load %arg12[%164, %c0_85] : memref<64x512xf32, #tpu.memory_space<vmem>>, vector<8x512xf32>
    %c0_86 = arith.constant 0 : index
    %c0_87 = arith.constant 0 : index
    %166 = vector.load %arg9[%c0_86, %c0_87] : memref<8x128xf32, #tpu.memory_space<vmem>>, vector<8x128xf32>
    %167 = arith.truncf %166 : vector<8x128xf32> to vector<8x128xbf16>
    %c0_88 = arith.constant 0 : index
    %c0_89 = arith.constant 0 : index
    %168 = vector.load %arg4[%c0_88, %c0_89] : memref<128x512xbf16, #tpu.memory_space<vmem>>, vector<128x512xbf16>
    %cst_90 = arith.constant dense<0.000000e+00> : vector<8x512xf32>
    %169 = tpu.matmul %167, %168, %cst_90 {dimension_numbers = #tpu.dot_dimension_numbers<[1], [0], [0], [1], [0, 0, 1, 1], [], []>} : vector<8x128xbf16>, vector<128x512xbf16>, vector<8x512xf32> -> vector<8x512xf32>
    %170 = arith.addf %165, %169 : vector<8x512xf32>
    %171 = vector.extract_strided_slice %170 {offsets = [0, 0], sizes = [8, 384], strides = [1, 1]} : vector<8x512xf32> to vector<8x384xf32>
    %172 = arith.negf %171 : vector<8x384xf32>
    %173 = math.exp %172 : vector<8x384xf32>
    %cst_91 = arith.constant 1.000000e+00 : f32
    %174 = vector.broadcast %cst_91 : f32 to vector<8x384xf32>
    %175 = arith.addf %174, %173 : vector<8x384xf32>
    %176 = arith.divf %174, %175 : vector<8x384xf32>
    %177 = vector.extract_strided_slice %170 {offsets = [0, 384], sizes = [8, 128], strides = [1, 1]} : vector<8x512xf32> to vector<8x128xf32>
    %178 = math.tanh %177 : vector<8x128xf32>
    %179 = vector.extract_strided_slice %176 {offsets = [0, 0], sizes = [8, 128], strides = [1, 1]} : vector<8x384xf32> to vector<8x128xf32>
    %180 = vector.extract_strided_slice %176 {offsets = [0, 128], sizes = [8, 128], strides = [1, 1]} : vector<8x384xf32> to vector<8x128xf32>
    %181 = vector.extract_strided_slice %176 {offsets = [0, 256], sizes = [8, 128], strides = [1, 1]} : vector<8x384xf32> to vector<8x128xf32>
    %c0_92 = arith.constant 0 : index
    %c0_93 = arith.constant 0 : index
    %182 = vector.load %arg10[%c0_92, %c0_93] : memref<8x128xf32, #tpu.memory_space<vmem>>, vector<8x128xf32>
    %183 = arith.mulf %180, %182 : vector<8x128xf32>
    %184 = arith.mulf %179, %178 : vector<8x128xf32>
    %185 = arith.addf %183, %184 : vector<8x128xf32>
    %186 = math.tanh %185 : vector<8x128xf32>
    %187 = arith.mulf %181, %186 : vector<8x128xf32>
    %c0_94 = arith.constant 0 : index
    %c0_95 = arith.constant 0 : index
    %188 = vector.load %arg10[%c0_94, %c0_95] : memref<8x128xf32, #tpu.memory_space<vmem>>, vector<8x128xf32>
    tpu.vector_store %arg10[%c0_94, %c0_95], %185 {strides = array<i32>} : memref<8x128xf32, #tpu.memory_space<vmem>>, vector<8x128xf32>,
    %c0_96 = arith.constant 0 : index
    %c0_97 = arith.constant 0 : index
    %189 = vector.load %arg9[%c0_96, %c0_97] : memref<8x128xf32, #tpu.memory_space<vmem>>, vector<8x128xf32>
    tpu.vector_store %arg9[%c0_96, %c0_97], %187 {strides = array<i32>} : memref<8x128xf32, #tpu.memory_space<vmem>>, vector<8x128xf32>,
    %190 = arith.index_cast %163 : i32 to index
    %c0_98 = arith.constant 0 : index
    %191 = vector.load %arg11[%190, %c0_98] : memref<64x128xf32, #tpu.memory_space<vmem>>, vector<8x128xf32>
    tpu.vector_store %arg11[%190, %c0_98], %187 {strides = array<i32>} : memref<64x128xf32, #tpu.memory_space<vmem>>, vector<8x128xf32>,
    %c6_i32 = arith.constant 6 : i32
    %c8_i32_99 = arith.constant 8 : i32
    %192 = arith.muli %c6_i32, %c8_i32_99 : i32
    %193 = tpu.assume_multiple %192, 8 : i32
    %194 = arith.index_cast %193 : i32 to index
    %c0_100 = arith.constant 0 : index
    %195 = vector.load %arg12[%194, %c0_100] : memref<64x512xf32, #tpu.memory_space<vmem>>, vector<8x512xf32>
    %c0_101 = arith.constant 0 : index
    %c0_102 = arith.constant 0 : index
    %196 = vector.load %arg9[%c0_101, %c0_102] : memref<8x128xf32, #tpu.memory_space<vmem>>, vector<8x128xf32>
    %197 = arith.truncf %196 : vector<8x128xf32> to vector<8x128xbf16>
    %c0_103 = arith.constant 0 : index
    %c0_104 = arith.constant 0 : index
    %198 = vector.load %arg4[%c0_103, %c0_104] : memref<128x512xbf16, #tpu.memory_space<vmem>>, vector<128x512xbf16>
    %cst_105 = arith.constant dense<0.000000e+00> : vector<8x512xf32>
    %199 = tpu.matmul %197, %198, %cst_105 {dimension_numbers = #tpu.dot_dimension_numbers<[1], [0], [0], [1], [0, 0, 1, 1], [], []>} : vector<8x128xbf16>, vector<128x512xbf16>, vector<8x512xf32> -> vector<8x512xf32>
    %200 = arith.addf %195, %199 : vector<8x512xf32>
    %201 = vector.extract_strided_slice %200 {offsets = [0, 0], sizes = [8, 384], strides = [1, 1]} : vector<8x512xf32> to vector<8x384xf32>
    %202 = arith.negf %201 : vector<8x384xf32>
    %203 = math.exp %202 : vector<8x384xf32>
    %cst_106 = arith.constant 1.000000e+00 : f32
    %204 = vector.broadcast %cst_106 : f32 to vector<8x384xf32>
    %205 = arith.addf %204, %203 : vector<8x384xf32>
    %206 = arith.divf %204, %205 : vector<8x384xf32>
    %207 = vector.extract_strided_slice %200 {offsets = [0, 384], sizes = [8, 128], strides = [1, 1]} : vector<8x512xf32> to vector<8x128xf32>
    %208 = math.tanh %207 : vector<8x128xf32>
    %209 = vector.extract_strided_slice %206 {offsets = [0, 0], sizes = [8, 128], strides = [1, 1]} : vector<8x384xf32> to vector<8x128xf32>
    %210 = vector.extract_strided_slice %206 {offsets = [0, 128], sizes = [8, 128], strides = [1, 1]} : vector<8x384xf32> to vector<8x128xf32>
    %211 = vector.extract_strided_slice %206 {offsets = [0, 256], sizes = [8, 128], strides = [1, 1]} : vector<8x384xf32> to vector<8x128xf32>
    %c0_107 = arith.constant 0 : index
    %c0_108 = arith.constant 0 : index
    %212 = vector.load %arg10[%c0_107, %c0_108] : memref<8x128xf32, #tpu.memory_space<vmem>>, vector<8x128xf32>
    %213 = arith.mulf %210, %212 : vector<8x128xf32>
    %214 = arith.mulf %209, %208 : vector<8x128xf32>
    %215 = arith.addf %213, %214 : vector<8x128xf32>
    %216 = math.tanh %215 : vector<8x128xf32>
    %217 = arith.mulf %211, %216 : vector<8x128xf32>
    %c0_109 = arith.constant 0 : index
    %c0_110 = arith.constant 0 : index
    %218 = vector.load %arg10[%c0_109, %c0_110] : memref<8x128xf32, #tpu.memory_space<vmem>>, vector<8x128xf32>
    tpu.vector_store %arg10[%c0_109, %c0_110], %215 {strides = array<i32>} : memref<8x128xf32, #tpu.memory_space<vmem>>, vector<8x128xf32>,
    %c0_111 = arith.constant 0 : index
    %c0_112 = arith.constant 0 : index
    %219 = vector.load %arg9[%c0_111, %c0_112] : memref<8x128xf32, #tpu.memory_space<vmem>>, vector<8x128xf32>
    tpu.vector_store %arg9[%c0_111, %c0_112], %217 {strides = array<i32>} : memref<8x128xf32, #tpu.memory_space<vmem>>, vector<8x128xf32>,
    %220 = arith.index_cast %193 : i32 to index
    %c0_113 = arith.constant 0 : index
    %221 = vector.load %arg11[%220, %c0_113] : memref<64x128xf32, #tpu.memory_space<vmem>>, vector<8x128xf32>
    tpu.vector_store %arg11[%220, %c0_113], %217 {strides = array<i32>} : memref<64x128xf32, #tpu.memory_space<vmem>>, vector<8x128xf32>,
    %c7_i32 = arith.constant 7 : i32
    %c8_i32_114 = arith.constant 8 : i32
    %222 = arith.muli %c7_i32, %c8_i32_114 : i32
    %223 = tpu.assume_multiple %222, 8 : i32
    %224 = arith.index_cast %223 : i32 to index
    %c0_115 = arith.constant 0 : index
    %225 = vector.load %arg12[%224, %c0_115] : memref<64x512xf32, #tpu.memory_space<vmem>>, vector<8x512xf32>
    %c0_116 = arith.constant 0 : index
    %c0_117 = arith.constant 0 : index
    %226 = vector.load %arg9[%c0_116, %c0_117] : memref<8x128xf32, #tpu.memory_space<vmem>>, vector<8x128xf32>
    %227 = arith.truncf %226 : vector<8x128xf32> to vector<8x128xbf16>
    %c0_118 = arith.constant 0 : index
    %c0_119 = arith.constant 0 : index
    %228 = vector.load %arg4[%c0_118, %c0_119] : memref<128x512xbf16, #tpu.memory_space<vmem>>, vector<128x512xbf16>
    %cst_120 = arith.constant dense<0.000000e+00> : vector<8x512xf32>
    %229 = tpu.matmul %227, %228, %cst_120 {dimension_numbers = #tpu.dot_dimension_numbers<[1], [0], [0], [1], [0, 0, 1, 1], [], []>} : vector<8x128xbf16>, vector<128x512xbf16>, vector<8x512xf32> -> vector<8x512xf32>
    %230 = arith.addf %225, %229 : vector<8x512xf32>
    %231 = vector.extract_strided_slice %230 {offsets = [0, 0], sizes = [8, 384], strides = [1, 1]} : vector<8x512xf32> to vector<8x384xf32>
    %232 = arith.negf %231 : vector<8x384xf32>
    %233 = math.exp %232 : vector<8x384xf32>
    %cst_121 = arith.constant 1.000000e+00 : f32
    %234 = vector.broadcast %cst_121 : f32 to vector<8x384xf32>
    %235 = arith.addf %234, %233 : vector<8x384xf32>
    %236 = arith.divf %234, %235 : vector<8x384xf32>
    %237 = vector.extract_strided_slice %230 {offsets = [0, 384], sizes = [8, 128], strides = [1, 1]} : vector<8x512xf32> to vector<8x128xf32>
    %238 = math.tanh %237 : vector<8x128xf32>
    %239 = vector.extract_strided_slice %236 {offsets = [0, 0], sizes = [8, 128], strides = [1, 1]} : vector<8x384xf32> to vector<8x128xf32>
    %240 = vector.extract_strided_slice %236 {offsets = [0, 128], sizes = [8, 128], strides = [1, 1]} : vector<8x384xf32> to vector<8x128xf32>
    %241 = vector.extract_strided_slice %236 {offsets = [0, 256], sizes = [8, 128], strides = [1, 1]} : vector<8x384xf32> to vector<8x128xf32>
    %c0_122 = arith.constant 0 : index
    %c0_123 = arith.constant 0 : index
    %242 = vector.load %arg10[%c0_122, %c0_123] : memref<8x128xf32, #tpu.memory_space<vmem>>, vector<8x128xf32>
    %243 = arith.mulf %240, %242 : vector<8x128xf32>
    %244 = arith.mulf %239, %238 : vector<8x128xf32>
    %245 = arith.addf %243, %244 : vector<8x128xf32>
    %246 = math.tanh %245 : vector<8x128xf32>
    %247 = arith.mulf %241, %246 : vector<8x128xf32>
    %c0_124 = arith.constant 0 : index
    %c0_125 = arith.constant 0 : index
    %248 = vector.load %arg10[%c0_124, %c0_125] : memref<8x128xf32, #tpu.memory_space<vmem>>, vector<8x128xf32>
    tpu.vector_store %arg10[%c0_124, %c0_125], %245 {strides = array<i32>} : memref<8x128xf32, #tpu.memory_space<vmem>>, vector<8x128xf32>,
    %c0_126 = arith.constant 0 : index
    %c0_127 = arith.constant 0 : index
    %249 = vector.load %arg9[%c0_126, %c0_127] : memref<8x128xf32, #tpu.memory_space<vmem>>, vector<8x128xf32>
    tpu.vector_store %arg9[%c0_126, %c0_127], %247 {strides = array<i32>} : memref<8x128xf32, #tpu.memory_space<vmem>>, vector<8x128xf32>,
    %250 = arith.index_cast %223 : i32 to index
    %c0_128 = arith.constant 0 : index
    %251 = vector.load %arg11[%250, %c0_128] : memref<64x128xf32, #tpu.memory_space<vmem>>, vector<8x128xf32>
    tpu.vector_store %arg11[%250, %c0_128], %247 {strides = array<i32>} : memref<64x128xf32, #tpu.memory_space<vmem>>, vector<8x128xf32>,
    %c8_i32_129 = arith.constant 8 : i32
    %c0_130 = arith.constant 0 : index
    %c0_131 = arith.constant 0 : index
    %252 = vector.load %arg11[%c0_130, %c0_131] : memref<64x128xf32, #tpu.memory_space<vmem>>, vector<64x128xf32>
    %253 = arith.truncf %252 : vector<64x128xf32> to vector<64x128xbf16>
    %c0_132 = arith.constant 0 : index
    %c0_133 = arith.constant 0 : index
    %254 = vector.load %arg6[%c0_132, %c0_133] : memref<128x128xbf16, #tpu.memory_space<vmem>>, vector<128x128xbf16>
    %cst_134 = arith.constant dense<0.000000e+00> : vector<64x128xf32>
    %255 = tpu.matmul %253, %254, %cst_134 {dimension_numbers = #tpu.dot_dimension_numbers<[1], [0], [0], [1], [0, 0, 1, 1], [], []>} : vector<64x128xbf16>, vector<128x128xbf16>, vector<64x128xf32> -> vector<64x128xf32>
    %c0_135 = arith.constant 0 : index
    %c0_136 = arith.constant 0 : index
    %256 = vector.load %arg7[%c0_135, %c0_136] : memref<1x128xf32, #tpu.memory_space<vmem>>, vector<1x128xf32>
    %257 = vector.broadcast %256 : vector<1x128xf32> to vector<64x128xf32>
    %258 = arith.addf %255, %257 : vector<64x128xf32>
    %c0_137 = arith.constant 0 : index
    %c0_138 = arith.constant 0 : index
    %c0_139 = arith.constant 0 : index
    %259 = vector.load %arg8[%c0_137, %c0_138, %c0_139] : memref<1x64x128xf32, #tpu.memory_space<vmem>>, vector<1x64x128xf32>
    %260 = vector.shape_cast %259 : vector<1x64x128xf32> to vector<64x128xf32>
    %261 = vector.shape_cast %258 : vector<64x128xf32> to vector<1x64x128xf32>
    tpu.vector_store %arg8[%c0_137, %c0_138, %c0_139], %261 {strides = array<i32>} : memref<1x64x128xf32, #tpu.memory_space<vmem>>, vector<1x64x128xf32>,
    return
  }
  func.func @transform_0(%arg0: i32, %arg1: i32) -> (i32, i32, i32) {
    %c0_i32 = arith.constant 0 : i32
    %c0_i32_0 = arith.constant 0 : i32
    return %arg0, %arg1, %c0_i32 : i32, i32, i32
  }
  func.func @transform_1(%arg0: i32, %arg1: i32) -> (i32, i32) {
    %c0_i32 = arith.constant 0 : i32
    %c0_i32_0 = arith.constant 0 : i32
    %c0_i32_1 = arith.constant 0 : i32
    return %c0_i32, %c0_i32_0 : i32, i32
  }
  func.func @transform_2(%arg0: i32, %arg1: i32) -> (i32, i32) {
    %c0_i32 = arith.constant 0 : i32
    %c0_i32_0 = arith.constant 0 : i32
    %c0_i32_1 = arith.constant 0 : i32
    return %c0_i32, %c0_i32_0 : i32, i32
  }
  func.func @transform_3(%arg0: i32, %arg1: i32) -> (i32, i32) {
    %c0_i32 = arith.constant 0 : i32
    %c0_i32_0 = arith.constant 0 : i32
    %c0_i32_1 = arith.constant 0 : i32
    return %c0_i32, %c0_i32_0 : i32, i32
  }
  func.func @transform_4(%arg0: i32, %arg1: i32) -> (i32, i32) {
    %c0_i32 = arith.constant 0 : i32
    %c0_i32_0 = arith.constant 0 : i32
    %c0_i32_1 = arith.constant 0 : i32
    return %c0_i32, %c0_i32_0 : i32, i32
  }
  func.func @transform_5(%arg0: i32, %arg1: i32) -> (i32, i32) {
    %c0_i32 = arith.constant 0 : i32
    %c0_i32_0 = arith.constant 0 : i32
    %c0_i32_1 = arith.constant 0 : i32
    return %c0_i32, %c0_i32_0 : i32, i32
  }
  func.func @transform_6(%arg0: i32, %arg1: i32) -> (i32, i32, i32) {
    %c0_i32 = arith.constant 0 : i32
    %c0_i32_0 = arith.constant 0 : i32
    return %arg0, %arg1, %c0_i32 : i32, i32, i32
  }
}

</mosaic_0001>

<bundles_post_ra>
// kernel: simple_lstm_forward.1
= control target key start
LH: loop header
LB: loop body
LE: loop exit
PB: predicated region body
PF: predicated region fallthrough
CT: control target
= control target key end

     0   :  { %v4506_v1 = vmov 0   ;;  %vm88_vm0 = vcmask 130048   ;;  %v3560_v36 = vmov 0.0|0.0   ;;  %v48_v50 = vlaneseq  ;;  %s4499_s1 = inlined_call_operand.vmem [shape: bf16[16,512], index: 1, kind: input, shape index: {}]   ;;  %s4500_s0 = inlined_call_operand.vmem [shape: f32[1,64,16], index: 0, kind: input, shape index: {}]   ;;  %s4501_s2 = inlined_call_operand.vmem [shape: bf16[128,512], index: 2, kind: input, shape index: {}]   ;;  %s4502_s3 = inlined_call_operand.vmem [shape: f32[1,512], index: 3, kind: input, shape index: {}]   ;;  %s4503_s4 = inlined_call_operand.vmem [shape: bf16[128,128], index: 4, kind: input, shape index: {}]   ;;  %s4504_s5 = inlined_call_operand.vmem [shape: f32[1,128], index: 5, kind: input, shape index: {}]   ;;  %s4505_s6 = inlined_call_operand.vmem [shape: f32[1,64,128], index: 6, kind: output, shape index: {}]  }
   0x1   :  { %v3312_v0 = vld [vmem:[%s4499_s1 + $0xc] ss:$16 sps:$4 sm:$0xff]   ;;  %206 = vmatprep.mubr.bf16.mxu1 %v4506_v1  ;;  %133 = vmatprep.mubr.bf16.mxu0 %v4506_v1  ;;  %v3314_v2 = vld [vmem:[%s4499_s1 + $0x8] ss:$16 sps:$4 sm:$0xff]   ;;  %v30_v3 = vld [vmem:[%s4500_s0] sm:$0xff] }
   0x2   :  { %v31_v4 = vld [vmem:[%s4500_s0 + $0x8] sm:$0xff]  ;;  %188 = vmatprep.subr.bf16.mxu1 %v3312_v0  ;;  %v3613_v6 = vld [vmem:[%s4501_s2 + $0xe0] ss:$16 sps:$4 sm:$0xff]   ;;  %v3618_v7 = vld [vmem:[%s4501_s2 + $0xe4] ss:$16 sps:$4 sm:$0xff]   ;;  %v49_v51 = vshrl.u32 %v48_v50, 7 }
   0x3   :  { %v38_v5 = vpack.c.bf16 %v31_v4, %v30_v3  ;;  %189 = vmatpush1.bf16.msra.mxu1 %v3314_v2  ;;  %v3623_v8 = vld [vmem:[%s4501_s2 + $0xc4] ss:$16 sps:$4 sm:$0xff]   ;;  %v3630_v9 = vld [vmem:[%s4501_s2 + $0xc0] ss:$16 sps:$4 sm:$0xff]   ;;  %v33_v11 = vld [vmem:[%s4500_s0 + $0x18] sm:$0xff] }
   0x4   :  { %480 = vmatprep.subr.bf16.mxu1 %v3618_v7  ;;  %v32_v10 = vld [vmem:[%s4500_s0 + $0x10] sm:$0xff]  ;;  %v34_v19 = vld [vmem:[%s4500_s0 + $0x20] sm:$0xff]  ;;  %v35_v20 = vld [vmem:[%s4500_s0 + $0x28] sm:$0xff]  ;;  %v58_v52 = vsub.s32 2, %v49_v51  ;;  %v62_v55 = vsub.s32 3, %v49_v51 }
   0x5   :  { %v3644_v12 = vld [vmem:[%s4501_s2 + $0xa4] ss:$16 sps:$4 sm:$0xff]   ;;  %v39_v13 = vpack.c.bf16 %v33_v11, %v32_v10  ;;  %v3650_v14 = vld [vmem:[%s4501_s2 + $0xa0] ss:$16 sps:$4 sm:$0xff]   ;;  %v40_v22 = vpack.c.bf16 %v35_v20, %v34_v19  ;;  %v37_v27 = vld [vmem:[%s4500_s0 + $0x38] sm:$0xff]  ;;  %v50_v20 = vsub.s32 0, %v49_v51 }
   0x6   :  { %2981 = vmatmul.mubr.msk.bf16.vlgmr.msra.gmra.mxu1 %vm88_vm0, %v38_v5  ;;  %v3656_v15 = vld [vmem:[%s4501_s2 + $0x84] ss:$16 sps:$4 sm:$0xff]   ;;  %v3661_v16 = vld [vmem:[%s4501_s2 + $0x80] ss:$16 sps:$4 sm:$0xff]   ;;  %v3747_v33 = vld [vmem:[%s4501_s2 + $0xec] ss:$16 sps:$4 sm:$0xff]  }
   0x7   :  { %481 = vmatpush1.bf16.msra.mxu1 %v3613_v6  ;;  %216 = vmatprep.mubr.bf16.mxu1 %v4506_v1  ;;  %v3336_v17 = vld [vmem:[%s4499_s1 + $0x4] ss:$16 sps:$4 sm:$0xff]   ;;  %v3338_v18 = vld [vmem:[%s4499_s1] ss:$16 sps:$4 sm:$0xff]   ;;  %v3756_v34 = vld [vmem:[%s4501_s2 + $0xe8] ss:$16 sps:$4 sm:$0xff]  }
   0x8   :  { %482 = vmatprep.subr.bf16.mxu1 %v3623_v8  ;;  %v3682_v21 = vld [vmem:[%s4501_s2 + $0x64] ss:$16 sps:$4 sm:$0xff]   ;;  %115 = vmatprep.subr.bf16.mxu0 %v3336_v17  ;;  %v3689_v23 = vld [vmem:[%s4501_s2 + $0x60] ss:$16 sps:$4 sm:$0xff]   ;;  %v3762_v35 = vld [vmem:[%s4501_s2 + $0xcc] ss:$16 sps:$4 sm:$0xff]  }
   0x9   :  { %116 = vmatpush1.bf16.msra.mxu0 %v3338_v18  ;;  %v3695_v24 = vld [vmem:[%s4501_s2 + $0x44] ss:$16 sps:$4 sm:$0xff]   ;;  %v3704_v25 = vld [vmem:[%s4501_s2 + $0x40] ss:$16 sps:$4 sm:$0xff]   ;;  %v3775_v37 = vld [vmem:[%s4501_s2 + $0xc8] ss:$16 sps:$4 sm:$0xff]  }
   0xa   :  { %795 = vmatprep.subr.bf16.mxu0 %v3618_v7  ;;  %v36_v26 = vld [vmem:[%s4500_s0 + $0x30] sm:$0xff]  ;;  %v3782_v38 = vld [vmem:[%s4501_s2 + $0xac] ss:$16 sps:$4 sm:$0xff]   ;;  %v3790_v39 = vld [vmem:[%s4501_s2 + $0xa8] ss:$16 sps:$4 sm:$0xff]  }
   0xb   :  { %483 = vmatpush1.bf16.msra.mxu1 %v3630_v9  ;;  %v3719_v28 = vld [vmem:[%s4501_s2 + $0x24] ss:$16 sps:$4 sm:$0xff]   ;;  %v41_v29 = vpack.c.bf16 %v37_v27, %v36_v26  ;;  %v3725_v30 = vld [vmem:[%s4501_s2 + $0x20] ss:$16 sps:$4 sm:$0xff]   ;;  %v3796_v40 = vld [vmem:[%s4501_s2 + $0x8c] ss:$16 sps:$4 sm:$0xff]  }
   0xc   :  { %484 = vmatprep.subr.bf16.mxu1 %v3644_v12  ;;  %2977 = vmatmul.mubr.msk.bf16.vlgmr.msra.gmra.mxu0 %vm88_vm0, %v38_v5  ;;  %v3730_v31 = vld [vmem:[%s4501_s2 + $0x4] ss:$16 sps:$4 sm:$0xff]   ;;  %v3739_v32 = vld [vmem:[%s4501_s2] ss:$16 sps:$4 sm:$0xff]   ;;  %v3806_v41 = vld [vmem:[%s4501_s2 + $0x88] ss:$16 sps:$4 sm:$0xff]  }
   0xd   :  { %796 = vmatpush1.bf16.msra.mxu0 %v3613_v6  ;;  %143 = vmatprep.mubr.bf16.mxu0 %v4506_v1  ;;  %v3812_v42 = vld [vmem:[%s4501_s2 + $0x6c] ss:$16 sps:$4 sm:$0xff]   ;;  %v3820_v43 = vld [vmem:[%s4501_s2 + $0x68] ss:$16 sps:$4 sm:$0xff]   ;;  %v46_v53 = vld [vmem:[%s4502_s3] sm:$0xf] }
   0xe   :  { %2982 = vmatmul.mubr.msk.bf16.gmra.mxu1 %vm88_vm0, %v39_v13  ;;  %797 = vmatprep.subr.bf16.mxu0 %v3623_v8  ;;  %v3826_v44 = vld [vmem:[%s4501_s2 + $0x4c] ss:$16 sps:$4 sm:$0xff]   ;;  %v3832_v45 = vld [vmem:[%s4501_s2 + $0x48] ss:$16 sps:$4 sm:$0xff]   ;;  %v3885_v57 = vrot.slane %v46_v53, %v58_v52  ;;  %v3887_v59 = vrot.slane %v46_v53, %v62_v55  ;;  %v3920_v55 = vrot.slane %v46_v53, %v50_v20 }
   0xf   :  { %485 = vmatpush1.bf16.msra.mxu1 %v3650_v14  ;;  %226 = vmatprep.mubr.bf16.mxu1 %v4506_v1  ;;  %v3838_v46 = vld [vmem:[%s4501_s2 + $0x2c] ss:$16 sps:$4 sm:$0xff]   ;;  %v3844_v47 = vld [vmem:[%s4501_s2 + $0x28] ss:$16 sps:$4 sm:$0xff]  }
  0x10   :  { %486 = vmatprep.subr.bf16.mxu1 %v3656_v15  ;;  %v3850_v48 = vld [vmem:[%s4501_s2 + $0xc] ss:$16 sps:$4 sm:$0xff]   ;;  %v3856_v49 = vld [vmem:[%s4501_s2 + $0x8] ss:$16 sps:$4 sm:$0xff]  }
  0x11   :  { %798 = vmatpush1.bf16.msra.mxu0 %v3630_v9 }
  0x12   :  { %799 = vmatprep.subr.bf16.mxu0 %v3644_v12 }
  0x13   :  { %487 = vmatpush1.bf16.msra.mxu1 %v3661_v16 }
  0x14   :  { %488 = vmatprep.subr.bf16.mxu1 %v3682_v21  ;;  %2978 = vmatmul.mubr.msk.bf16.gmra.mxu0 %vm88_vm0, %v39_v13 }
  0x15   :  { %800 = vmatpush1.bf16.msra.mxu0 %v3650_v14  ;;  %153 = vmatprep.mubr.bf16.mxu0 %v4506_v1 }
  0x16   :  { %2983 = vmatmul.mubr.msk.bf16.gmra.mxu1 %vm88_vm0, %v40_v22  ;;  %801 = vmatprep.subr.bf16.mxu0 %v3656_v15 }
  0x17   :  { %489 = vmatpush1.bf16.msra.mxu1 %v3689_v23  ;;  %236 = vmatprep.mubr.bf16.mxu1 %v4506_v1 }
  0x18   :  { %490 = vmatprep.subr.bf16.mxu1 %v3695_v24 }
  0x19   :  { %802 = vmatpush1.bf16.msra.mxu0 %v3661_v16 }
  0x1a   :  { %803 = vmatprep.subr.bf16.mxu0 %v3682_v21 }
  0x1b   :  { %491 = vmatpush1.bf16.msra.mxu1 %v3704_v25 }
  0x1c   :  { %492 = vmatprep.subr.bf16.mxu1 %v3719_v28  ;;  %2979 = vmatmul.mubr.msk.bf16.gmra.mxu0 %vm88_vm0, %v40_v22 }
  0x1d   :  { %804 = vmatpush1.bf16.msra.mxu0 %v3689_v23  ;;  %163 = vmatprep.mubr.bf16.mxu0 %v4506_v1 }
  0x1e   :  { %2984 = vmatmul.mubr.msk.bf16.gmra.mxu1 %vm88_vm0, %v41_v29  ;;  %805 = vmatprep.subr.bf16.mxu0 %v3695_v24 }
  0x1f   :  { %493 = vmatpush1.bf16.msra.mxu1 %v3725_v30  ;;  %512 = vmatprep.mubr.bf16.mxu1 %v4506_v1 }
  0x20   :  { %494 = vmatprep.subr.bf16.mxu1 %v3730_v31 }
  0x21   :  { %806 = vmatpush1.bf16.msra.mxu0 %v3704_v25 }
  0x22   :  { %807 = vmatprep.subr.bf16.mxu0 %v3719_v28 }
  0x23   :  { %495 = vmatpush1.bf16.msra.mxu1 %v3739_v32 }
  0x24   :  { %521 = vmatprep.subr.bf16.mxu1 %v3747_v33  ;;  %2980 = vmatmul.mubr.msk.bf16.gmra.mxu0 %vm88_vm0, %v41_v29  ;;  %v54_v29 = vsub.s32 1, %v49_v51 }
  0x25   :  { %808 = vmatpush1.bf16.msra.mxu0 %v3725_v30  ;;  %827 = vmatprep.mubr.bf16.mxu0 %v4506_v1 }
  0x26   :  { %513 = vmatmul.mubr.bf16.vlgmr.msra.gmra.mxu1 %v3560_v36  ;;  %809 = vmatprep.subr.bf16.mxu0 %v3730_v31 }
  0x27   :  { %522 = vmatpush1.bf16.msra.mxu1 %v3756_v34  ;;  %553 = vmatprep.mubr.bf16.mxu1 %v4506_v1 }
  0x28   :  { %523 = vmatprep.subr.bf16.mxu1 %v3762_v35 }
  0x29   :  { %810 = vmatpush1.bf16.msra.mxu0 %v3739_v32 }
  0x2a   :  { %1111 = vmatprep.subr.bf16.mxu0 %v3618_v7 }
  0x2b   :  { %524 = vmatpush1.bf16.msra.mxu1 %v3775_v37 }
  0x2c   :  { %525 = vmatprep.subr.bf16.mxu1 %v3782_v38 }
  0x2f   :  { %526 = vmatpush1.bf16.msra.mxu1 %v3790_v39 }
  0x30   :  { %527 = vmatprep.subr.bf16.mxu1 %v3796_v40 }
  0x33   :  { %528 = vmatpush1.bf16.msra.mxu1 %v3806_v41 }
  0x34   :  { %529 = vmatprep.subr.bf16.mxu1 %v3812_v42 }
  0x37   :  { %530 = vmatpush1.bf16.msra.mxu1 %v3820_v43 }
  0x38   :  { %531 = vmatprep.subr.bf16.mxu1 %v3826_v44 }
  0x3b   :  { %532 = vmatpush1.bf16.msra.mxu1 %v3832_v45 }
  0x3c   :  { %533 = vmatprep.subr.bf16.mxu1 %v3838_v46 }
  0x3f   :  { %534 = vmatpush1.bf16.msra.mxu1 %v3844_v47 }
  0x40   :  { %535 = vmatprep.subr.bf16.mxu1 %v3850_v48 }
  0x43   :  { %536 = vmatpush1.bf16.msra.mxu1 %v3856_v49 }
  0x44   :  { %836 = vmatprep.subr.bf16.mxu1 %v3747_v33 }
  0x46   :  { %554 = vmatmul.mubr.bf16.vlgmr.msra.gmra.mxu1 %v3560_v36 }
  0x47   :  { %837 = vmatpush1.bf16.msra.mxu1 %v3756_v34  ;;  %868 = vmatprep.mubr.bf16.mxu1 %v4506_v1 }
  0x48   :  { %838 = vmatprep.subr.bf16.mxu1 %v3762_v35 }
  0x4b   :  { %839 = vmatpush1.bf16.msra.mxu1 %v3775_v37 }
  0x4c   :  { %840 = vmatprep.subr.bf16.mxu1 %v3782_v38 }
  0x4f   :  { %841 = vmatpush1.bf16.msra.mxu1 %v3790_v39 }
  0x50   :  { %842 = vmatprep.subr.bf16.mxu1 %v3796_v40 }
  0x53   :  { %843 = vmatpush1.bf16.msra.mxu1 %v3806_v41 }
  0x54   :  { %844 = vmatprep.subr.bf16.mxu1 %v3812_v42 }
  0x57   :  { %845 = vmatpush1.bf16.msra.mxu1 %v3820_v43 }
  0x58   :  { %846 = vmatprep.subr.bf16.mxu1 %v3826_v44 }
  0x5b   :  { %847 = vmatpush1.bf16.msra.mxu1 %v3832_v45 }
  0x5c   :  { %848 = vmatprep.subr.bf16.mxu1 %v3838_v46 }
  0x5f   :  { %849 = vmatpush1.bf16.msra.mxu1 %v3844_v47 }
  0x60   :  { %850 = vmatprep.subr.bf16.mxu1 %v3850_v48 }
  0x63   :  { %851 = vmatpush1.bf16.msra.mxu1 %v3856_v49 }
  0x64   :  { %1152 = vmatprep.subr.bf16.mxu1 %v3747_v33 }
  0xc6   :  { %v3881_v54 = vpop.f32.mrf.mxu1 }
  0xc8   :  { %v3883_v56 = vpop.f32.mrf.mxu1 }
  0xca   :  { %v212_v58 = vpop.f32.mrf.mxu1 }
  0xcb   :  { %v3890_v60 = vadd.f32 %v212_v58, %v3885_v57 }
  0xcc   :  { %v214_v61 = vpop.f32.mrf.mxu1  ;;  %v135_v11 = vpop.f32.mrf.mxu0 }
  0xcd   :  { %v3893_v62 = vadd.f32 %v214_v61, %v3887_v59 }
  0xce   :  { %v218_v63 = vpop.f32.mrf.mxu1  ;;  %v137_v18 = vpop.f32.mrf.mxu0 }
  0xcf   :  { %v3896_v0 = vadd.f32 %v218_v63, %v3885_v57 }
  0xd0   :  { %v220_v2 = vpop.f32.mrf.mxu1  ;;  %v3910_v26 = vpop.f32.mrf.mxu0 }
  0xd1   :  { %v3899_v3 = vadd.f32 %v220_v2, %v3887_v59  ;;  %v3925_v2 = vrot.slane %v46_v53, %v54_v29 }
  0xd2   :  { %v222_v4 = vpop.f32.mrf.mxu1  ;;  %v3915_v50 = vpop.f32.mrf.mxu0 }
  0xd3   :  { %v3902_v5 = vadd.f32 %v222_v4, %v3885_v57 }
  0xd4   :  { %v224_v10 = vpop.f32.mrf.mxu1  ;;  %v145_v61 = vpop.f32.mrf.mxu0 }
  0xd5   :  { %4508 = vst [vmem:[#allocation6_spill] sm:$0xff] %v3902_v5  ;;  %v3905_v13 = vadd.f32 %v224_v10, %v3887_v59  ;;  %v3928_v4 = vadd.f32 %v145_v61, %v3920_v55 }
  0xd6   :  { %v228_v17 = vpop.f32.mrf.mxu1  ;;  %v147_v51 = vpop.f32.mrf.mxu0 }
  0xd7   :  { %4509 = vst [vmem:[#allocation7_spill] sm:$0xff] %v3905_v13  ;;  %v3908_v19 = vadd.f32 %v228_v17, %v3885_v57 }
  0xd8   :  { %v230_v22 = vpop.f32.mrf.mxu1 }
  0xd9   :  { %4510 = vst [vmem:[#allocation8_spill] sm:$0xff] %v3908_v19  ;;  %v3913_v27 = vadd.f32 %v230_v22, %v3887_v59  ;;  %v3934_v22 = vadd.f32 %v147_v51, %v3925_v2 }
  0xda   :  { %v232_v36 = vpop.f32.mrf.mxu1 }
  0xdb   :  { %4511 = vst [vmem:[#allocation9_spill] sm:$0xff] %v3913_v27  ;;  %v3918_v52 = vadd.f32 %v232_v36, %v3885_v57  ;;  %v149_v36 = vpop.f32.mrf.mxu0 }
  0xdc   :  { %v234_v58 = vpop.f32.mrf.mxu1 }
  0xdd   :  { %4512 = vst [vmem:[#allocation10_spill] sm:$0xff] %v3918_v52  ;;  %v3923_v63 = vadd.f32 %v234_v58, %v3887_v59  ;;  %v3940_v58 = vadd.f32 %v149_v36, %v3920_v55  ;;  %v151_v29 = vpop.f32.mrf.mxu0 }
  0xde   :  { %v238_v10 = vpop.f32.mrf.mxu1 }
  0xdf   :  { %4513 = vst [vmem:[#allocation11_spill] sm:$0xff] %v3923_v63  ;;  %v3931_v17 = vadd.f32 %v238_v10, %v3885_v57  ;;  %v3946_v63 = vadd.f32 %v151_v29, %v3925_v2 }
  0xe0   :  { %v240_v20 = vpop.f32.mrf.mxu1 }
  0xe1   :  { %4514 = vst [vmem:[#allocation12_spill] sm:$0xff] %v3931_v17  ;;  %v3937_v1 = vadd.f32 %v240_v20, %v3887_v59  ;;  %4517 = vst [vmem:[#allocation15_spill] sm:$0xff] %v3946_v63  ;;  %v155_v17 = vpop.f32.mrf.mxu0 }
  0xe2   :  { %v242_v53 = vpop.f32.mrf.mxu1  ;;  %v3952_v52 = vadd.f32 %v155_v17, %v3920_v55 }
  0xe3   :  { %4515 = vst [vmem:[#allocation13_spill] sm:$0xff] %v3937_v1  ;;  %v3943_v61 = vadd.f32 %v242_v53, %v3885_v57  ;;  %v157_v1 = vpop.f32.mrf.mxu0  ;;  %v136_v53 = vadd.f32 %v135_v11, %v3920_v55 }
  0xe4   :  { %v244_v10 = vpop.f32.mrf.mxu1  ;;  %4519 = vst [vmem:[#allocation17_spill] sm:$0xff] %v3952_v52  ;;  %v3955_v36 = vadd.f32 %v157_v1, %v3925_v2 }
  0xe5   :  { %4516 = vst [vmem:[#allocation14_spill] sm:$0xff] %v3943_v61  ;;  %v3949_v51 = vadd.f32 %v244_v10, %v3887_v59  ;;  %v159_v19 = vpop.f32.mrf.mxu0  ;;  %v138_v61 = vadd.f32 %v137_v18, %v3925_v2 }
  0xe6   :  { %v514_v20 = vpop.f32.mrf.mxu1  ;;  %4520 = vst [vmem:[#allocation18_spill] sm:$0xff] %v3955_v36  ;;  %v3959_v29 = vadd.f32 %v159_v19, %v3920_v55 }
  0xe7   :  { %4518 = vst [vmem:[#allocation16_spill] sm:$0xff] %v3949_v51  ;;  %v161_v10 = vpop.f32.mrf.mxu0  ;;  %v562_v5 = vadd.f32 %v514_v20, %v136_v53  ;;  %v209_v20 = vadd.f32 %v3881_v54, %v3885_v57 }
  0xe8   :  { %v516_v27 = vpop.f32.mrf.mxu1  ;;  %4521 = vst [vmem:[#allocation19_spill] sm:$0xff] %v3959_v29  ;;  %v3963_v51 = vadd.f32 %v161_v10, %v3925_v2 }
  0xe9   :  { %v165_v52 = vpop.f32.mrf.mxu0  ;;  %v563_v36 = vadd.f32 %v516_v27, %v138_v61  ;;  %v3017_v29 = vmul.f32 -1.442695, %v562_v5 }
  0xea   :  { %v518_v13 = vpop.f32.mrf.mxu1  ;;  %4522 = vst [vmem:[#allocation20_spill] sm:$0xff] %v3963_v51  ;;  %v3966_v1 = vadd.f32 %v165_v52, %v3920_v55 }
  0xeb   :  { %v167_v63 = vpop.f32.mrf.mxu0  ;;  %v3018_v13 = vmul.f32 -1.442695, %v563_v36  ;;  %3431 = vpow2.f32 %v3017_v29 }
  0xec   :  { %v519_v17 = vpop.f32.mrf.mxu1  ;;  %4523 = vst [vmem:[#allocation21_spill] sm:$0xff] %v3966_v1  ;;  %v3969_v11 = vadd.f32 %v167_v63, %v3925_v2  ;;  %v211_v63 = vadd.f32 %v3883_v56, %v3887_v59 }
  0xed   :  { %v169_v19 = vpop.f32.mrf.mxu0  ;;  %3433 = vpow2.f32 %v3018_v13 }
  0xee   :  { %4524 = vst [vmem:[#allocation22_spill] sm:$0xff] %v3969_v11  ;;  %v3972_v18 = vadd.f32 %v169_v19, %v3920_v55 }
  0xf0   :  { %4525 = vst [vmem:[#allocation23_spill] sm:$0xff] %v3972_v18 }
  0xf8   :  { %v3432_v10 = vpop.eup %3431 }
  0xf9   :  { %v575_v52 = vadd.f32 1.0, %v3432_v10 }
  0xfa   :  { %v3434_v17 = vpop.eup %3433 }
  0xfb   :  { %v576_v53 = vadd.f32 1.0, %v3434_v17  ;;  %3435 = vrcp.f32 %v575_v52 }
  0xfd   :  { %3437 = vrcp.f32 %v576_v53 }
 0x106   :  { %v555_v27 = vpop.f32.mrf.mxu1 }
 0x107   :  { %v564_v61 = vadd.f32 %v555_v27, %v209_v20 }
 0x108   :  { %v557_v11 = vpop.f32.mrf.mxu1  ;;  %v3436_v13 = vpop.eup %3435 }
 0x109   :  { %v3019_v5 = vmul.f32 -1.442695, %v564_v61  ;;  %v565_v19 = vadd.f32 %v557_v11, %v211_v63 }
 0x10a   :  { %v559_v36 = vpop.f32.mrf.mxu1  ;;  %v3438_v18 = vpop.eup %3437 }
 0x10b   :  { %3439 = vpow2.f32 %v3019_v5  ;;  %v586_v10 = vmul.f32 0.0, %v3438_v18 }
 0x10c   :  { %3441 = vtanh.f32 %v565_v19  ;;  %v560_v29 = vpop.f32.mrf.mxu1 }
 0x118   :  { %v3440_v1 = vpop.eup %3439 }
 0x119   :  { %v3442_v54 = vpop.eup %3441  ;;  %v577_v57 = vadd.f32 1.0, %v3440_v1  ;;  %v4526_v1 = vmov 0  }
 0x11a   :  { %v587_v17 = vmul.f32 %v3442_v54, %v3436_v13 }
 0x11b   :  { %3443 = vrcp.f32 %v577_v57 }
 0x11c   :  { %v3978_v51 = vadd.f32 %v587_v17, %v586_v10 }
 0x11e   :  { %3445 = vtanh.f32 %v3978_v51 }
 0x128   :  { %v3444_v56 = vpop.eup %3443 }
 0x12b   :  { %v3446_v59 = vpop.eup %3445 }
 0x12c   :  { %v3981_v11 = vmul.f32 %v3446_v59, %v3444_v56 }
 0x12e   :  { %v602_v20 = vpack.c.bf16 %v3981_v11, %v3981_v11 }
 0x130   :  { %828 = vmatmul.mubr.bf16.vlgmr.msra.gmra.mxu0 %v602_v20  ;;  %869 = vmatmul.mubr.bf16.vlgmr.msra.gmra.mxu1 %v602_v20 }
 0x131   :  { %1112 = vmatpush1.bf16.msra.mxu0 %v3613_v6  ;;  %1153 = vmatpush1.bf16.msra.mxu1 %v3756_v34 }
 0x132   :  { %1113 = vmatprep.subr.bf16.mxu0 %v3623_v8  ;;  %1154 = vmatprep.subr.bf16.mxu1 %v3762_v35 }
 0x133   :  { %1143 = vmatprep.mubr.bf16.mxu0 %v4526_v1  ;;  %1184 = vmatprep.mubr.bf16.mxu1 %v4526_v1 }
 0x135   :  { %1114 = vmatpush1.bf16.msra.mxu0 %v3630_v9  ;;  %1155 = vmatpush1.bf16.msra.mxu1 %v3775_v37 }
 0x136   :  { %1115 = vmatprep.subr.bf16.mxu0 %v3644_v12  ;;  %1156 = vmatprep.subr.bf16.mxu1 %v3782_v38 }
 0x139   :  { %1116 = vmatpush1.bf16.msra.mxu0 %v3650_v14  ;;  %1157 = vmatpush1.bf16.msra.mxu1 %v3790_v39 }
 0x13a   :  { %1117 = vmatprep.subr.bf16.mxu0 %v3656_v15  ;;  %1158 = vmatprep.subr.bf16.mxu1 %v3796_v40 }
 0x13d   :  { %1118 = vmatpush1.bf16.msra.mxu0 %v3661_v16  ;;  %1159 = vmatpush1.bf16.msra.mxu1 %v3806_v41 }
 0x13e   :  { %1119 = vmatprep.subr.bf16.mxu0 %v3682_v21  ;;  %1160 = vmatprep.subr.bf16.mxu1 %v3812_v42 }
 0x141   :  { %1120 = vmatpush1.bf16.msra.mxu0 %v3689_v23  ;;  %1161 = vmatpush1.bf16.msra.mxu1 %v3820_v43 }
 0x142   :  { %1121 = vmatprep.subr.bf16.mxu0 %v3695_v24  ;;  %1162 = vmatprep.subr.bf16.mxu1 %v3826_v44  ;;  %v4019_v24 = vpop.f32.mrf.mxu0 }
 0x145   :  { %1122 = vmatpush1.bf16.msra.mxu0 %v3704_v25  ;;  %1163 = vmatpush1.bf16.msra.mxu1 %v3832_v45  ;;  %v140_v25 = vadd.f32 %v3910_v26, %v3920_v55 }
 0x146   :  { %1123 = vmatprep.subr.bf16.mxu0 %v3719_v28  ;;  %1164 = vmatprep.subr.bf16.mxu1 %v3838_v46 }
 0x149   :  { %1124 = vmatpush1.bf16.msra.mxu0 %v3725_v30  ;;  %1165 = vmatpush1.bf16.msra.mxu1 %v3844_v47 }
 0x14a   :  { %1125 = vmatprep.subr.bf16.mxu0 %v3730_v31  ;;  %1166 = vmatprep.subr.bf16.mxu1 %v3850_v48  ;;  %v142_v31 = vadd.f32 %v3915_v50, %v3925_v2 }
 0x14d   :  { %1126 = vmatpush1.bf16.msra.mxu0 %v3739_v32  ;;  %1167 = vmatpush1.bf16.msra.mxu1 %v3856_v49 }
 0x14e   :  { %1427 = vmatprep.subr.bf16.mxu0 %v3618_v7  ;;  %1468 = vmatprep.subr.bf16.mxu1 %v3747_v33 }
 0x1f0   :  { %v829_v28 = vpop.f32.mrf.mxu0  ;;  %v870_v30 = vpop.f32.mrf.mxu1 }
 0x1f1   :  { %v877_v18 = vadd.f32 %v829_v28, %v140_v25  ;;  %v879_v19 = vadd.f32 %v870_v30, %v3890_v60 }
 0x1f2   :  { %v831_v52 = vpop.f32.mrf.mxu0  ;;  %v872_v53 = vpop.f32.mrf.mxu1 }
 0x1f3   :  { %v3052_v32 = vmul.f32 -1.442695, %v877_v18  ;;  %v878_v27 = vadd.f32 %v831_v52, %v142_v31  ;;  %v3054_v26 = vmul.f32 -1.442695, %v879_v19  ;;  %v880_v55 = vadd.f32 %v872_v53, %v3893_v62  ;;  %v4129_v19 = vld [vmem:[%s4501_s2 + $0xe8] ss:$16 sps:$4 sm:$0xff]  }
 0x1f4   :  { %v833_v63 = vpop.f32.mrf.mxu0  ;;  %v874_v61 = vpop.f32.mrf.mxu1 }
 0x1f5   :  { %3447 = vpow2.f32 %v3052_v32  ;;  %v3053_v7 = vmul.f32 -1.442695, %v878_v27 }
 0x1f6   :  { %v834_v33 = vpop.f32.mrf.mxu0  ;;  %v875_v5 = vpop.f32.mrf.mxu1 }
 0x1f7   :  { %3449 = vpow2.f32 %v3053_v7  ;;  %v4114_v7 = vld [vmem:[%s4501_s2 + $0xe4] ss:$16 sps:$4 sm:$0xff]   ;;  %v4119_v33 = vld [vmem:[%s4501_s2 + $0xec] ss:$16 sps:$4 sm:$0xff]   ;;  %v4124_v5 = vld [vmem:[%s4501_s2 + $0xe0] ss:$16 sps:$4 sm:$0xff]  }
 0x1f8   :  { %3451 = vpow2.f32 %v3054_v26  ;;  %v4138_v26 = vld [vmem:[%s4501_s2 + $0xc4] ss:$16 sps:$4 sm:$0xff]  }
 0x1f9   :  { %3453 = vtanh.f32 %v880_v55  ;;  %v4143_v55 = vld [vmem:[%s4501_s2 + $0xcc] ss:$16 sps:$4 sm:$0xff]  }
 0x202   :  { %v3448_v36 = vpop.eup %3447 }
 0x203   :  { %v890_v29 = vadd.f32 1.0, %v3448_v36  ;;  %v4148_v36 = vld [vmem:[%s4501_s2 + $0xc0] ss:$16 sps:$4 sm:$0xff]  }
 0x204   :  { %v3450_v50 = vpop.eup %3449 }
 0x205   :  { %3455 = vrcp.f32 %v890_v29  ;;  %v891_v13 = vadd.f32 1.0, %v3450_v50  ;;  %v3452_v54 = vpop.eup %3451  ;;  %v4153_v29 = vld [vmem:[%s4501_s2 + $0xc8] ss:$16 sps:$4 sm:$0xff]   ;;  %v4162_v50 = vld [vmem:[%s4501_s2 + $0xa4] ss:$16 sps:$4 sm:$0xff]  }
 0x206   :  { %v3454_v57 = vpop.eup %3453  ;;  %v892_v59 = vadd.f32 1.0, %v3452_v54  ;;  %v4172_v54 = vld [vmem:[%s4501_s2 + $0xa0] ss:$16 sps:$4 sm:$0xff]  }
 0x207   :  { %3457 = vrcp.f32 %v891_v13  ;;  %v4167_v13 = vld [vmem:[%s4501_s2 + $0xac] ss:$16 sps:$4 sm:$0xff]  }
 0x208   :  { %3459 = vrcp.f32 %v892_v59  ;;  %v4201_v59 = vld [vmem:[%s4501_s2 + $0x88] ss:$16 sps:$4 sm:$0xff]  }
 0x212   :  { %v3456_v10 = vpop.eup %3455 }
 0x213   :  { %v902_v17 = vmul.f32 %v3456_v10, %v3454_v57  ;;  %v4177_v57 = vld [vmem:[%s4501_s2 + $0xa8] ss:$16 sps:$4 sm:$0xff]   ;;  %v4186_v10 = vld [vmem:[%s4501_s2 + $0x84] ss:$16 sps:$4 sm:$0xff]  }
 0x214   :  { %v3458_v56 = vpop.eup %3457 }
 0x215   :  { %v901_v20 = vmul.f32 %v3458_v56, %v3978_v51  ;;  %v3460_v62 = vpop.eup %3459  ;;  %v4196_v56 = vld [vmem:[%s4501_s2 + $0x80] ss:$16 sps:$4 sm:$0xff]  }
 0x217   :  { %v4028_v60 = vadd.f32 %v902_v17, %v901_v20  ;;  %v4191_v17 = vld [vmem:[%s4501_s2 + $0x8c] ss:$16 sps:$4 sm:$0xff]   ;;  %v4208_v20 = vld [vmem:[%s4501_s2 + $0x64] ss:$16 sps:$4 sm:$0xff]  }
 0x219   :  { %3461 = vtanh.f32 %v4028_v60 }
 0x226   :  { %v3462_v25 = vpop.eup %3461 }
 0x227   :  { %v4031_v28 = vmul.f32 %v3462_v25, %v3460_v62  ;;  %v4220_v62 = vld [vmem:[%s4501_s2 + $0x60] ss:$16 sps:$4 sm:$0xff]   ;;  %v4225_v25 = vld [vmem:[%s4501_s2 + $0x68] ss:$16 sps:$4 sm:$0xff]  }
 0x229   :  { %v918_v30 = vpack.c.bf16 %v4031_v28, %v4031_v28 }
 0x22b   :  { %1144 = vmatmul.mubr.bf16.vlgmr.msra.gmra.mxu0 %v918_v30  ;;  %1185 = vmatmul.mubr.bf16.vlgmr.msra.gmra.mxu1 %v918_v30  ;;  %v4232_v30 = vld [vmem:[%s4501_s2 + $0x4c] ss:$16 sps:$4 sm:$0xff]  }
 0x22c   :  { %1428 = vmatpush1.bf16.msra.mxu0 %v3613_v6  ;;  %1469 = vmatpush1.bf16.msra.mxu1 %v3756_v34  ;;  %v4064_v6 = vld [vmem:[%s4501_s2 + $0x40] ss:$16 sps:$4 sm:$0xff]  }
 0x22d   :  { %1429 = vmatprep.subr.bf16.mxu0 %v3623_v8  ;;  %1470 = vmatprep.subr.bf16.mxu1 %v3762_v35  ;;  %v4069_v8 = vld [vmem:[%s4501_s2 + $0x44] ss:$16 sps:$4 sm:$0xff]  }
 0x22e   :  { %1459 = vmatprep.mubr.bf16.mxu0 %v4526_v1  ;;  %1500 = vmatprep.mubr.bf16.mxu1 %v4526_v1 }
 0x230   :  { %1430 = vmatpush1.bf16.msra.mxu0 %v3630_v9  ;;  %1471 = vmatpush1.bf16.msra.mxu1 %v3775_v37  ;;  %v4074_v9 = vld [vmem:[%s4501_s2 + $0x24] ss:$16 sps:$4 sm:$0xff]  }
 0x231   :  { %1431 = vmatprep.subr.bf16.mxu0 %v3644_v12  ;;  %1472 = vmatprep.subr.bf16.mxu1 %v3782_v38  ;;  %v4081_v12 = vld [vmem:[%s4501_s2 + $0x20] ss:$16 sps:$4 sm:$0xff]  }
 0x234   :  { %1432 = vmatpush1.bf16.msra.mxu0 %v3650_v14  ;;  %1473 = vmatpush1.bf16.msra.mxu1 %v3790_v39  ;;  %v4087_v14 = vld [vmem:[%s4501_s2 + $0x4] ss:$16 sps:$4 sm:$0xff]  }
 0x235   :  { %1433 = vmatprep.subr.bf16.mxu0 %v3656_v15  ;;  %1474 = vmatprep.subr.bf16.mxu1 %v3796_v40  ;;  %v4093_v15 = vld [vmem:[%s4501_s2] ss:$16 sps:$4 sm:$0xff]  }
 0x238   :  { %1434 = vmatpush1.bf16.msra.mxu0 %v3661_v16  ;;  %1475 = vmatpush1.bf16.msra.mxu1 %v3806_v41 }
 0x239   :  { %1435 = vmatprep.subr.bf16.mxu0 %v3682_v21  ;;  %1476 = vmatprep.subr.bf16.mxu1 %v3812_v42 }
 0x23c   :  { %1436 = vmatpush1.bf16.msra.mxu0 %v3689_v23  ;;  %1477 = vmatpush1.bf16.msra.mxu1 %v3820_v43 }
 0x23d   :  { %1478 = vmatprep.subr.bf16.mxu1 %v3826_v44  ;;  %1437 = vmatprep.subr.bf16.mxu0 %v4069_v8 }
 0x240   :  { %1479 = vmatpush1.bf16.msra.mxu1 %v3832_v45  ;;  %1438 = vmatpush1.bf16.msra.mxu0 %v4064_v6 }
 0x241   :  { %1480 = vmatprep.subr.bf16.mxu1 %v3838_v46  ;;  %1439 = vmatprep.subr.bf16.mxu0 %v4074_v9 }
 0x244   :  { %1481 = vmatpush1.bf16.msra.mxu1 %v3844_v47  ;;  %1440 = vmatpush1.bf16.msra.mxu0 %v4081_v12 }
 0x245   :  { %1482 = vmatprep.subr.bf16.mxu1 %v3850_v48  ;;  %1441 = vmatprep.subr.bf16.mxu0 %v4087_v14 }
 0x248   :  { %1483 = vmatpush1.bf16.msra.mxu1 %v3856_v49  ;;  %1442 = vmatpush1.bf16.msra.mxu0 %v4093_v15 }
 0x249   :  { %1743 = vmatprep.subr.bf16.mxu0 %v4114_v7  ;;  %1784 = vmatprep.subr.bf16.mxu1 %v4119_v33 }
 0x2eb   :  { %v1145_v16 = vpop.f32.mrf.mxu0  ;;  %v1186_v21 = vpop.f32.mrf.mxu1 }
 0x2ec   :  { %v1193_v23 = vadd.f32 %v1145_v16, %v3928_v4  ;;  %v1195_v44 = vadd.f32 %v1186_v21, %v3896_v0  ;;  %v4239_v16 = vld [vmem:[%s4501_s2 + $0x48] ss:$16 sps:$4 sm:$0xff]   ;;  %v4246_v21 = vld [vmem:[%s4501_s2 + $0x2c] ss:$16 sps:$4 sm:$0xff]  }
 0x2ed   :  { %v1147_v34 = vpop.f32.mrf.mxu0  ;;  %v1188_v35 = vpop.f32.mrf.mxu1 }
 0x2ee   :  { %v3087_v37 = vmul.f32 -1.442695, %v1193_v23  ;;  %v1194_v38 = vadd.f32 %v1147_v34, %v3934_v22  ;;  %v3089_v45 = vmul.f32 -1.442695, %v1195_v44  ;;  %v1196_v46 = vadd.f32 %v1188_v35, %v3899_v3  ;;  %v4253_v23 = vld [vmem:[%s4501_s2 + $0x28] ss:$16 sps:$4 sm:$0xff]  }
 0x2ef   :  { %v1149_v39 = vpop.f32.mrf.mxu0  ;;  %v1190_v40 = vpop.f32.mrf.mxu1  ;;  %v4260_v34 = vld [vmem:[%s4501_s2 + $0xc] ss:$16 sps:$4 sm:$0xff]   ;;  %v4267_v35 = vld [vmem:[%s4501_s2 + $0x8] ss:$16 sps:$4 sm:$0xff]  }
 0x2f0   :  { %3463 = vpow2.f32 %v3087_v37  ;;  %v3088_v41 = vmul.f32 -1.442695, %v1194_v38 }
 0x2f1   :  { %v1150_v42 = vpop.f32.mrf.mxu0  ;;  %v1191_v43 = vpop.f32.mrf.mxu1 }
 0x2f2   :  { %3465 = vpow2.f32 %v3088_v41  ;;  %v4527_v43 = vld [vmem:[#allocation15_spill] sm:$0xff] }
 0x2f3   :  { %3467 = vpow2.f32 %v3089_v45 }
 0x2f4   :  { %3469 = vtanh.f32 %v1196_v46 }
 0x2fd   :  { %v3464_v47 = vpop.eup %3463 }
 0x2fe   :  { %v1206_v48 = vadd.f32 1.0, %v3464_v47 }
 0x2ff   :  { %v3466_v49 = vpop.eup %3465 }
 0x300   :  { %3471 = vrcp.f32 %v1206_v48  ;;  %v1207_v4 = vadd.f32 1.0, %v3466_v49  ;;  %v3468_v22 = vpop.eup %3467 }
 0x301   :  { %v3470_v51 = vpop.eup %3469  ;;  %v1208_v53 = vadd.f32 1.0, %v3468_v22 }
 0x302   :  { %3473 = vrcp.f32 %v1207_v4  ;;  %v4528_v4 = vld [vmem:[#allocation6_spill] sm:$0xff] }
 0x303   :  { %3475 = vrcp.f32 %v1208_v53 }
 0x30d   :  { %v3472_v31 = vpop.eup %3471 }
 0x30e   :  { %v1218_v18 = vmul.f32 %v3472_v31, %v3470_v51  ;;  %v4529_v31 = vld [vmem:[#allocation7_spill] sm:$0xff] }
 0x30f   :  { %v3474_v52 = vpop.eup %3473 }
 0x310   :  { %v1217_v32 = vmul.f32 %v3474_v52, %v4028_v60  ;;  %v3476_v3 = vpop.eup %3475  ;;  %v4213_v60 = vld [vmem:[%s4501_s2 + $0x6c] ss:$16 sps:$4 sm:$0xff]  }
 0x312   :  { %v4102_v0 = vadd.f32 %v1218_v18, %v1217_v32 }
 0x314   :  { %3477 = vtanh.f32 %v4102_v0 }
 0x321   :  { %v3478_v27 = vpop.eup %3477 }
 0x322   :  { %v4105_v63 = vmul.f32 %v3478_v27, %v3476_v3 }
 0x324   :  { %v1234_v61 = vpack.c.bf16 %v4105_v63, %v4105_v63 }
 0x326   :  { %1460 = vmatmul.mubr.bf16.vlgmr.msra.gmra.mxu0 %v1234_v61  ;;  %1501 = vmatmul.mubr.bf16.vlgmr.msra.gmra.mxu1 %v1234_v61 }
 0x327   :  { %1775 = vmatprep.mubr.bf16.mxu0 %v4526_v1  ;;  %1816 = vmatprep.mubr.bf16.mxu1 %v4526_v1 }
 0x328   :  { %1744 = vmatpush1.bf16.msra.mxu0 %v4124_v5  ;;  %1785 = vmatpush1.bf16.msra.mxu1 %v4129_v19 }
 0x329   :  { %1745 = vmatprep.subr.bf16.mxu0 %v4138_v26  ;;  %1786 = vmatprep.subr.bf16.mxu1 %v4143_v55 }
 0x32c   :  { %1746 = vmatpush1.bf16.msra.mxu0 %v4148_v36  ;;  %1787 = vmatpush1.bf16.msra.mxu1 %v4153_v29 }
 0x32d   :  { %1747 = vmatprep.subr.bf16.mxu0 %v4162_v50  ;;  %1788 = vmatprep.subr.bf16.mxu1 %v4167_v13 }
 0x330   :  { %1748 = vmatpush1.bf16.msra.mxu0 %v4172_v54  ;;  %1789 = vmatpush1.bf16.msra.mxu1 %v4177_v57 }
 0x331   :  { %1749 = vmatprep.subr.bf16.mxu0 %v4186_v10  ;;  %1790 = vmatprep.subr.bf16.mxu1 %v4191_v17 }
 0x334   :  { %1750 = vmatpush1.bf16.msra.mxu0 %v4196_v56  ;;  %1791 = vmatpush1.bf16.msra.mxu1 %v4201_v59 }
 0x335   :  { %1751 = vmatprep.subr.bf16.mxu0 %v4208_v20  ;;  %1792 = vmatprep.subr.bf16.mxu1 %v4213_v60 }
 0x338   :  { %1752 = vmatpush1.bf16.msra.mxu0 %v4220_v62  ;;  %1793 = vmatpush1.bf16.msra.mxu1 %v4225_v25 }
 0x339   :  { %1753 = vmatprep.subr.bf16.mxu0 %v4069_v8  ;;  %1794 = vmatprep.subr.bf16.mxu1 %v4232_v30 }
 0x33c   :  { %1754 = vmatpush1.bf16.msra.mxu0 %v4064_v6  ;;  %1795 = vmatpush1.bf16.msra.mxu1 %v4239_v16 }
 0x33d   :  { %1755 = vmatprep.subr.bf16.mxu0 %v4074_v9  ;;  %1796 = vmatprep.subr.bf16.mxu1 %v4246_v21 }
 0x340   :  { %1756 = vmatpush1.bf16.msra.mxu0 %v4081_v12  ;;  %1797 = vmatpush1.bf16.msra.mxu1 %v4253_v23 }
 0x341   :  { %1757 = vmatprep.subr.bf16.mxu0 %v4087_v14  ;;  %1798 = vmatprep.subr.bf16.mxu1 %v4260_v34 }
 0x344   :  { %1758 = vmatpush1.bf16.msra.mxu0 %v4093_v15  ;;  %1799 = vmatpush1.bf16.msra.mxu1 %v4267_v35 }
 0x345   :  { %2059 = vmatprep.subr.bf16.mxu0 %v4114_v7  ;;  %2100 = vmatprep.subr.bf16.mxu1 %v4119_v33 }
 0x3e6   :  { %v1461_v37 = vpop.f32.mrf.mxu0  ;;  %v1502_v38 = vpop.f32.mrf.mxu1 }
 0x3e7   :  { %v1509_v39 = vadd.f32 %v1461_v37, %v3940_v58  ;;  %v1511_v22 = vadd.f32 %v1502_v38, %v4528_v4 }
 0x3e8   :  { %v1463_v40 = vpop.f32.mrf.mxu0  ;;  %v1504_v41 = vpop.f32.mrf.mxu1 }
 0x3e9   :  { %v3122_v42 = vmul.f32 -1.442695, %v1509_v39  ;;  %v1510_v44 = vadd.f32 %v1463_v40, %v4527_v43  ;;  %v3124_v51 = vmul.f32 -1.442695, %v1511_v22  ;;  %v1512_v18 = vadd.f32 %v1504_v41, %v4529_v31 }
 0x3ea   :  { %v1465_v45 = vpop.f32.mrf.mxu0  ;;  %v1506_v46 = vpop.f32.mrf.mxu1 }
 0x3eb   :  { %3479 = vpow2.f32 %v3122_v42  ;;  %v3123_v47 = vmul.f32 -1.442695, %v1510_v44 }
 0x3ec   :  { %v1466_v48 = vpop.f32.mrf.mxu0  ;;  %v1507_v49 = vpop.f32.mrf.mxu1 }
 0x3ed   :  { %3481 = vpow2.f32 %v3123_v47  ;;  %v4530_v47 = vld [vmem:[#allocation17_spill] sm:$0xff] }
 0x3ee   :  { %3483 = vpow2.f32 %v3124_v51  ;;  %v4531_v51 = vld [vmem:[#allocation18_spill] sm:$0xff] }
 0x3ef   :  { %3485 = vtanh.f32 %v1512_v18 }
 0x3f8   :  { %v3480_v52 = vpop.eup %3479 }
 0x3f9   :  { %v1522_v53 = vadd.f32 1.0, %v3480_v52 }
 0x3fa   :  { %v3482_v58 = vpop.eup %3481 }
 0x3fb   :  { %3487 = vrcp.f32 %v1522_v53  ;;  %v1523_v32 = vadd.f32 1.0, %v3482_v58  ;;  %v3484_v3 = vpop.eup %3483 }
 0x3fc   :  { %v3486_v27 = vpop.eup %3485  ;;  %v1524_v40 = vadd.f32 1.0, %v3484_v3  ;;  %v4532_v3 = vld [vmem:[#allocation8_spill] sm:$0xff] }
 0x3fd   :  { %3489 = vrcp.f32 %v1523_v32 }
 0x3fe   :  { %3491 = vrcp.f32 %v1524_v40 }
 0x408   :  { %v3488_v61 = vpop.eup %3487 }
 0x409   :  { %v1534_v37 = vmul.f32 %v3488_v61, %v3486_v27 }
 0x40a   :  { %v3490_v39 = vpop.eup %3489 }
 0x40b   :  { %v1533_v42 = vmul.f32 %v3490_v39, %v4102_v0  ;;  %v3492_v41 = vpop.eup %3491 }
 0x40d   :  { %v4280_v38 = vadd.f32 %v1534_v37, %v1533_v42  ;;  %v4533_v37 = vld [vmem:[#allocation9_spill] sm:$0xff] }
 0x40f   :  { %3493 = vtanh.f32 %v4280_v38 }
 0x41c   :  { %v3494_v43 = vpop.eup %3493 }
 0x41d   :  { %v4283_v44 = vmul.f32 %v3494_v43, %v3492_v41 }
 0x41f   :  { %v1550_v45 = vpack.c.bf16 %v4283_v44, %v4283_v44 }
 0x421   :  { %1776 = vmatmul.mubr.bf16.vlgmr.msra.gmra.mxu0 %v1550_v45  ;;  %1817 = vmatmul.mubr.bf16.vlgmr.msra.gmra.mxu1 %v1550_v45 }
 0x422   :  { %2060 = vmatpush1.bf16.msra.mxu0 %v4124_v5  ;;  %2101 = vmatpush1.bf16.msra.mxu1 %v4129_v19 }
 0x423   :  { %2061 = vmatprep.subr.bf16.mxu0 %v4138_v26  ;;  %2102 = vmatprep.subr.bf16.mxu1 %v4143_v55 }
 0x424   :  { %2091 = vmatprep.mubr.bf16.mxu0 %v4526_v1  ;;  %2132 = vmatprep.mubr.bf16.mxu1 %v4526_v1 }
 0x426   :  { %2062 = vmatpush1.bf16.msra.mxu0 %v4148_v36  ;;  %2103 = vmatpush1.bf16.msra.mxu1 %v4153_v29 }
 0x427   :  { %2063 = vmatprep.subr.bf16.mxu0 %v4162_v50  ;;  %2104 = vmatprep.subr.bf16.mxu1 %v4167_v13 }
 0x42a   :  { %2064 = vmatpush1.bf16.msra.mxu0 %v4172_v54  ;;  %2105 = vmatpush1.bf16.msra.mxu1 %v4177_v57 }
 0x42b   :  { %2065 = vmatprep.subr.bf16.mxu0 %v4186_v10  ;;  %2106 = vmatprep.subr.bf16.mxu1 %v4191_v17 }
 0x42e   :  { %2066 = vmatpush1.bf16.msra.mxu0 %v4196_v56  ;;  %2107 = vmatpush1.bf16.msra.mxu1 %v4201_v59 }
 0x42f   :  { %2067 = vmatprep.subr.bf16.mxu0 %v4208_v20  ;;  %2108 = vmatprep.subr.bf16.mxu1 %v4213_v60 }
 0x432   :  { %2068 = vmatpush1.bf16.msra.mxu0 %v4220_v62  ;;  %2109 = vmatpush1.bf16.msra.mxu1 %v4225_v25 }
 0x433   :  { %2069 = vmatprep.subr.bf16.mxu0 %v4069_v8  ;;  %2110 = vmatprep.subr.bf16.mxu1 %v4232_v30 }
 0x436   :  { %2070 = vmatpush1.bf16.msra.mxu0 %v4064_v6  ;;  %2111 = vmatpush1.bf16.msra.mxu1 %v4239_v16 }
 0x437   :  { %2071 = vmatprep.subr.bf16.mxu0 %v4074_v9  ;;  %2112 = vmatprep.subr.bf16.mxu1 %v4246_v21 }
 0x43a   :  { %2072 = vmatpush1.bf16.msra.mxu0 %v4081_v12  ;;  %2113 = vmatpush1.bf16.msra.mxu1 %v4253_v23 }
 0x43b   :  { %2073 = vmatprep.subr.bf16.mxu0 %v4087_v14  ;;  %2114 = vmatprep.subr.bf16.mxu1 %v4260_v34 }
 0x43e   :  { %2074 = vmatpush1.bf16.msra.mxu0 %v4093_v15  ;;  %2115 = vmatpush1.bf16.msra.mxu1 %v4267_v35 }
 0x43f   :  { %2375 = vmatprep.subr.bf16.mxu0 %v4114_v7  ;;  %2416 = vmatprep.subr.bf16.mxu1 %v4119_v33 }
 0x4e1   :  { %v1777_v0 = vpop.f32.mrf.mxu0  ;;  %v1818_v46 = vpop.f32.mrf.mxu1 }
 0x4e2   :  { %v1825_v48 = vadd.f32 %v1777_v0, %v4530_v47  ;;  %v1827_v27 = vadd.f32 %v1818_v46, %v4532_v3 }
 0x4e3   :  { %v1779_v49 = vpop.f32.mrf.mxu0  ;;  %v1820_v4 = vpop.f32.mrf.mxu1 }
 0x4e4   :  { %v3157_v22 = vmul.f32 -1.442695, %v1825_v48  ;;  %v1826_v31 = vadd.f32 %v1779_v49, %v4531_v51  ;;  %v3159_v61 = vmul.f32 -1.442695, %v1827_v27  ;;  %v1828_v39 = vadd.f32 %v1820_v4, %v4533_v37 }
 0x4e5   :  { %v1781_v18 = vpop.f32.mrf.mxu0  ;;  %v1822_v52 = vpop.f32.mrf.mxu1 }
 0x4e6   :  { %3495 = vpow2.f32 %v3157_v22  ;;  %v3158_v53 = vmul.f32 -1.442695, %v1826_v31 }
 0x4e7   :  { %v1782_v58 = vpop.f32.mrf.mxu0  ;;  %v1823_v32 = vpop.f32.mrf.mxu1 }
 0x4e8   :  { %3497 = vpow2.f32 %v3158_v53  ;;  %v4535_v32 = vld [vmem:[#allocation20_spill] sm:$0xff] }
 0x4e9   :  { %3499 = vpow2.f32 %v3159_v61 }
 0x4ea   :  { %3501 = vtanh.f32 %v1828_v39  ;;  %v4536_v39 = vld [vmem:[#allocation10_spill] sm:$0xff] }
 0x4f3   :  { %v3496_v40 = vpop.eup %3495 }
 0x4f4   :  { %v1838_v42 = vadd.f32 1.0, %v3496_v40 }
 0x4f5   :  { %v3498_v41 = vpop.eup %3497 }
 0x4f6   :  { %3503 = vrcp.f32 %v1838_v42  ;;  %v1839_v43 = vadd.f32 1.0, %v3498_v41  ;;  %v3500_v45 = vpop.eup %3499 }
 0x4f7   :  { %v3502_v0 = vpop.eup %3501  ;;  %v1840_v22 = vadd.f32 1.0, %v3500_v45 }
 0x4f8   :  { %3505 = vrcp.f32 %v1839_v43 }
 0x4f9   :  { %3507 = vrcp.f32 %v1840_v22 }
 0x503   :  { %v3504_v47 = vpop.eup %3503 }
 0x504   :  { %v1850_v48 = vmul.f32 %v3504_v47, %v3502_v0 }
 0x505   :  { %v3506_v49 = vpop.eup %3505 }
 0x506   :  { %v1849_v51 = vmul.f32 %v3506_v49, %v4280_v38  ;;  %v3508_v4 = vpop.eup %3507 }
 0x508   :  { %v4326_v46 = vadd.f32 %v1850_v48, %v1849_v51 }
 0x50a   :  { %3509 = vtanh.f32 %v4326_v46 }
 0x517   :  { %v3510_v31 = vpop.eup %3509 }
 0x518   :  { %v4329_v18 = vmul.f32 %v3510_v31, %v3508_v4 }
 0x51a   :  { %v1866_v52 = vpack.c.bf16 %v4329_v18, %v4329_v18 }
 0x51c   :  { %2092 = vmatmul.mubr.bf16.vlgmr.msra.gmra.mxu0 %v1866_v52  ;;  %2133 = vmatmul.mubr.bf16.vlgmr.msra.gmra.mxu1 %v1866_v52 }
 0x51d   :  { %2376 = vmatpush1.bf16.msra.mxu0 %v4124_v5  ;;  %2417 = vmatpush1.bf16.msra.mxu1 %v4129_v19 }
 0x51e   :  { %2377 = vmatprep.subr.bf16.mxu0 %v4138_v26  ;;  %2418 = vmatprep.subr.bf16.mxu1 %v4143_v55 }
 0x51f   :  { %2407 = vmatprep.mubr.bf16.mxu0 %v4526_v1  ;;  %2448 = vmatprep.mubr.bf16.mxu1 %v4526_v1 }
 0x521   :  { %2378 = vmatpush1.bf16.msra.mxu0 %v4148_v36  ;;  %2419 = vmatpush1.bf16.msra.mxu1 %v4153_v29 }
 0x522   :  { %2379 = vmatprep.subr.bf16.mxu0 %v4162_v50  ;;  %2420 = vmatprep.subr.bf16.mxu1 %v4167_v13 }
 0x525   :  { %2380 = vmatpush1.bf16.msra.mxu0 %v4172_v54  ;;  %2421 = vmatpush1.bf16.msra.mxu1 %v4177_v57 }
 0x526   :  { %2381 = vmatprep.subr.bf16.mxu0 %v4186_v10  ;;  %2422 = vmatprep.subr.bf16.mxu1 %v4191_v17 }
 0x529   :  { %2382 = vmatpush1.bf16.msra.mxu0 %v4196_v56  ;;  %2423 = vmatpush1.bf16.msra.mxu1 %v4201_v59 }
 0x52a   :  { %2383 = vmatprep.subr.bf16.mxu0 %v4208_v20  ;;  %2424 = vmatprep.subr.bf16.mxu1 %v4213_v60 }
 0x52d   :  { %2384 = vmatpush1.bf16.msra.mxu0 %v4220_v62  ;;  %2425 = vmatpush1.bf16.msra.mxu1 %v4225_v25 }
 0x52e   :  { %2385 = vmatprep.subr.bf16.mxu0 %v4069_v8  ;;  %2426 = vmatprep.subr.bf16.mxu1 %v4232_v30 }
 0x531   :  { %2386 = vmatpush1.bf16.msra.mxu0 %v4064_v6  ;;  %2427 = vmatpush1.bf16.msra.mxu1 %v4239_v16 }
 0x532   :  { %2387 = vmatprep.subr.bf16.mxu0 %v4074_v9  ;;  %2428 = vmatprep.subr.bf16.mxu1 %v4246_v21  ;;  %v4534_v9 = vld [vmem:[#allocation19_spill] sm:$0xff] }
 0x535   :  { %2388 = vmatpush1.bf16.msra.mxu0 %v4081_v12  ;;  %2429 = vmatpush1.bf16.msra.mxu1 %v4253_v23 }
 0x536   :  { %2389 = vmatprep.subr.bf16.mxu0 %v4087_v14  ;;  %2430 = vmatprep.subr.bf16.mxu1 %v4260_v34 }
 0x539   :  { %2390 = vmatpush1.bf16.msra.mxu0 %v4093_v15  ;;  %2431 = vmatpush1.bf16.msra.mxu1 %v4267_v35 }
 0x53a   :  { %2691 = vmatprep.subr.bf16.mxu0 %v4114_v7  ;;  %2732 = vmatprep.subr.bf16.mxu1 %v4119_v33  ;;  %v4537_v33 = vld [vmem:[#allocation11_spill] sm:$0xff] }
 0x5dc   :  { %v2093_v6 = vpop.f32.mrf.mxu0  ;;  %v2134_v8 = vpop.f32.mrf.mxu1 }
 0x5dd   :  { %v2141_v38 = vadd.f32 %v2093_v6, %v4534_v9  ;;  %v2143_v7 = vadd.f32 %v2134_v8, %v4536_v39 }
 0x5de   :  { %v2095_v53 = vpop.f32.mrf.mxu0  ;;  %v2136_v12 = vpop.f32.mrf.mxu1 }
 0x5df   :  { %v3192_v58 = vmul.f32 -1.442695, %v2141_v38  ;;  %v2142_v3 = vadd.f32 %v2095_v53, %v4535_v32  ;;  %v3194_v40 = vmul.f32 -1.442695, %v2143_v7  ;;  %v2144_v42 = vadd.f32 %v2136_v12, %v4537_v33 }
 0x5e0   :  { %v2097_v14 = vpop.f32.mrf.mxu0  ;;  %v2138_v27 = vpop.f32.mrf.mxu1 }
 0x5e1   :  { %3511 = vpow2.f32 %v3192_v58  ;;  %v3193_v61 = vmul.f32 -1.442695, %v2142_v3 }
 0x5e2   :  { %v2098_v15 = vpop.f32.mrf.mxu0  ;;  %v2139_v37 = vpop.f32.mrf.mxu1 }
 0x5e3   :  { %3513 = vpow2.f32 %v3193_v61 }
 0x5e4   :  { %3515 = vpow2.f32 %v3194_v40 }
 0x5e5   :  { %3517 = vtanh.f32 %v2144_v42 }
 0x5ee   :  { %v3512_v41 = vpop.eup %3511 }
 0x5ef   :  { %v2154_v43 = vadd.f32 1.0, %v3512_v41 }
 0x5f0   :  { %v3514_v45 = vpop.eup %3513 }
 0x5f1   :  { %3519 = vrcp.f32 %v2154_v43  ;;  %v2155_v0 = vadd.f32 1.0, %v3514_v45  ;;  %v3516_v47 = vpop.eup %3515  ;;  %v3424_v43 = vld [vmem:[%s4503_s4 + $0x30] sm:$0xff]   ;;  %v2814_v45 = vpack.c.bf16 %v4031_v28, %v3981_v11  ;;  %v3427_v11 = vld [vmem:[%s4503_s4 + $0x18] sm:$0xff]  }
 0x5f2   :  { %v3518_v48 = vpop.eup %3517  ;;  %v2156_v4 = vadd.f32 1.0, %v3516_v47  ;;  %v3426_v47 = vld [vmem:[%s4503_s4 + $0x20] sm:$0xff]   ;;  %v3428_v28 = vld [vmem:[%s4503_s4 + $0x10] sm:$0xff]  }
 0x5f3   :  { %3521 = vrcp.f32 %v2155_v0  ;;  %v3425_v0 = vld [vmem:[%s4503_s4 + $0x28] sm:$0xff]  }
 0x5f4   :  { %3523 = vrcp.f32 %v2156_v4 }
 0x5fe   :  { %v3520_v49 = vpop.eup %3519 }
 0x5ff   :  { %v2166_v22 = vmul.f32 %v3520_v49, %v3518_v48  ;;  %v3429_v48 = vld [vmem:[%s4503_s4 + $0x8] sm:$0xff]   ;;  %v3430_v49 = vld [vmem:[%s4503_s4] sm:$0xff]  }
 0x600   :  { %v3522_v51 = vpop.eup %3521 }
 0x601   :  { %v2165_v31 = vmul.f32 %v3522_v51, %v4326_v46  ;;  %v3524_v6 = vpop.eup %3523 }
 0x603   :  { %v4372_v52 = vadd.f32 %v2166_v22, %v2165_v31  ;;  %v2815_v22 = vpack.c.bf16 %v4283_v44, %v4105_v63 }
 0x605   :  { %3525 = vtanh.f32 %v4372_v52 }
 0x612   :  { %v3526_v8 = vpop.eup %3525 }
 0x613   :  { %v4375_v9 = vmul.f32 %v3526_v8, %v3524_v6  ;;  %v4542_v6 = vld [vmem:[#allocation23_spill] sm:$0xff] }
 0x615   :  { %v2182_v38 = vpack.c.bf16 %v4375_v9, %v4375_v9  ;;  %v2816_v51 = vpack.c.bf16 %v4375_v9, %v4329_v18  ;;  %v4543_v18 = vld [vmem:[#allocation14_spill] sm:$0xff] }
 0x617   :  { %2408 = vmatmul.mubr.bf16.vlgmr.msra.gmra.mxu0 %v2182_v38  ;;  %2449 = vmatmul.mubr.bf16.vlgmr.msra.gmra.mxu1 %v2182_v38 }
 0x618   :  { %2692 = vmatpush1.bf16.msra.mxu0 %v4124_v5  ;;  %2733 = vmatpush1.bf16.msra.mxu1 %v4129_v19  ;;  %v3416_v5 = vld [vmem:[%s4501_s2 + $0x44] ss:$16 sps:$4 sm:$0xff]   ;;  %v3417_v19 = vld [vmem:[%s4501_s2 + $0x20] ss:$16 sps:$4 sm:$0xff]  }
 0x619   :  { %2693 = vmatprep.subr.bf16.mxu0 %v4138_v26  ;;  %2734 = vmatprep.subr.bf16.mxu1 %v4143_v55  ;;  %v3419_v26 = vld [vmem:[%s4501_s2 + $0x24] ss:$16 sps:$4 sm:$0xff]  }
 0x61a   :  { %2723 = vmatprep.mubr.bf16.mxu0 %v4526_v1  ;;  %2764 = vmatprep.mubr.bf16.mxu1 %v4526_v1  ;;  %v3414_v1 = vld [vmem:[%s4501_s2 + $0x40] ss:$16 sps:$4 sm:$0xff]   ;;  %v3422_v55 = vld [vmem:[%s4501_s2 + $0x4] ss:$16 sps:$4 sm:$0xff]  }
 0x61c   :  { %2694 = vmatpush1.bf16.msra.mxu0 %v4148_v36  ;;  %2735 = vmatpush1.bf16.msra.mxu1 %v4153_v29  ;;  %v3420_v36 = vld [vmem:[%s4501_s2] ss:$16 sps:$4 sm:$0xff]   ;;  %v3423_v29 = vld [vmem:[%s4503_s4 + $0x38] sm:$0xff]  }
 0x61d   :  { %2695 = vmatprep.subr.bf16.mxu0 %v4162_v50  ;;  %2736 = vmatprep.subr.bf16.mxu1 %v4167_v13 }
 0x620   :  { %2696 = vmatpush1.bf16.msra.mxu0 %v4172_v54  ;;  %2737 = vmatpush1.bf16.msra.mxu1 %v4177_v57  ;;  %v4538_v54 = vld [vmem:[#allocation21_spill] sm:$0xff] }
 0x621   :  { %2697 = vmatprep.subr.bf16.mxu0 %v4186_v10  ;;  %2738 = vmatprep.subr.bf16.mxu1 %v4191_v17 }
 0x624   :  { %2698 = vmatpush1.bf16.msra.mxu0 %v4196_v56  ;;  %2739 = vmatpush1.bf16.msra.mxu1 %v4201_v59  ;;  %v4539_v59 = vld [vmem:[#allocation22_spill] sm:$0xff] }
 0x625   :  { %2699 = vmatprep.subr.bf16.mxu0 %v4208_v20  ;;  %2740 = vmatprep.subr.bf16.mxu1 %v4213_v60 }
 0x628   :  { %2700 = vmatpush1.bf16.msra.mxu0 %v4220_v62  ;;  %2741 = vmatpush1.bf16.msra.mxu1 %v4225_v25 }
 0x629   :  { %2742 = vmatprep.subr.bf16.mxu1 %v4232_v30  ;;  %2701 = vmatprep.subr.bf16.mxu0 %v3416_v5 }
 0x62c   :  { %2743 = vmatpush1.bf16.msra.mxu1 %v4239_v16  ;;  %2702 = vmatpush1.bf16.msra.mxu0 %v3414_v1 }
 0x62d   :  { %2744 = vmatprep.subr.bf16.mxu1 %v4246_v21  ;;  %2703 = vmatprep.subr.bf16.mxu0 %v3419_v26  ;;  %v4540_v21 = vld [vmem:[#allocation12_spill] sm:$0xff] }
 0x630   :  { %2745 = vmatpush1.bf16.msra.mxu1 %v4253_v23  ;;  %2704 = vmatpush1.bf16.msra.mxu0 %v3417_v19 }
 0x631   :  { %2746 = vmatprep.subr.bf16.mxu1 %v4260_v34  ;;  %2705 = vmatprep.subr.bf16.mxu0 %v3422_v55 }
 0x634   :  { %2747 = vmatpush1.bf16.msra.mxu1 %v4267_v35  ;;  %2706 = vmatpush1.bf16.msra.mxu0 %v3420_v36  ;;  %v4541_v35 = vld [vmem:[#allocation13_spill] sm:$0xff] }
 0x635   :  { %3286 = vmatprep.subr.bf16.mxu0 %v3423_v29 }
 0x6d7   :  { %v2409_v50 = vpop.f32.mrf.mxu0  ;;  %v2450_v13 = vpop.f32.mrf.mxu1 }
 0x6d8   :  { %v2457_v57 = vadd.f32 %v2409_v50, %v4538_v54  ;;  %v2459_v23 = vadd.f32 %v2450_v13, %v4540_v21  ;;  %v4544_v50 = vld [vmem:[#allocation16_spill] sm:$0xff] }
 0x6d9   :  { %v2411_v10 = vpop.f32.mrf.mxu0  ;;  %v2452_v17 = vpop.f32.mrf.mxu1 }
 0x6da   :  { %v3227_v56 = vmul.f32 -1.442695, %v2457_v57  ;;  %v2458_v20 = vadd.f32 %v2411_v10, %v4539_v59  ;;  %v3229_v34 = vmul.f32 -1.442695, %v2459_v23  ;;  %v2460_v46 = vadd.f32 %v2452_v17, %v4541_v35  ;;  %v3265_v10 = vld [vmem:[%s4504_s5] ss:$0 sm:$0xff] }
 0x6db   :  { %v2413_v60 = vpop.f32.mrf.mxu0  ;;  %v2454_v62 = vpop.f32.mrf.mxu1 }
 0x6dc   :  { %3527 = vpow2.f32 %v3227_v56  ;;  %v3228_v25 = vmul.f32 -1.442695, %v2458_v20 }
 0x6dd   :  { %v2414_v30 = vpop.f32.mrf.mxu0  ;;  %v2455_v16 = vpop.f32.mrf.mxu1 }
 0x6de   :  { %3529 = vpow2.f32 %v3228_v25 }
 0x6df   :  { %3531 = vpow2.f32 %v3229_v34 }
 0x6e0   :  { %3533 = vtanh.f32 %v2460_v46 }
 0x6e9   :  { %v3528_v53 = vpop.eup %3527 }
 0x6ea   :  { %v2470_v12 = vadd.f32 1.0, %v3528_v53 }
 0x6eb   :  { %v3530_v58 = vpop.eup %3529 }
 0x6ec   :  { %3535 = vrcp.f32 %v2470_v12  ;;  %v2471_v32 = vadd.f32 1.0, %v3530_v58  ;;  %v3532_v3 = vpop.eup %3531 }
 0x6ed   :  { %v3534_v14 = vpop.eup %3533  ;;  %v2472_v37 = vadd.f32 1.0, %v3532_v3 }
 0x6ee   :  { %3537 = vrcp.f32 %v2471_v32 }
 0x6ef   :  { %3539 = vrcp.f32 %v2472_v37 }
 0x6f9   :  { %v3536_v27 = vpop.eup %3535 }
 0x6fa   :  { %v2482_v61 = vmul.f32 %v3536_v27, %v3534_v14 }
 0x6fb   :  { %v3538_v15 = vpop.eup %3537 }
 0x6fc   :  { %v2481_v39 = vmul.f32 %v3538_v15, %v4372_v52  ;;  %v3540_v40 = vpop.eup %3539  ;;  %v172_v52 = vadd.f32 %v4019_v24, %v3925_v2 }
 0x6fe   :  { %v4431_v7 = vadd.f32 %v2482_v61, %v2481_v39 }
 0x700   :  { %3541 = vtanh.f32 %v4431_v7 }
 0x70d   :  { %v3542_v33 = vpop.eup %3541 }
 0x70e   :  { %v4434_v42 = vmul.f32 %v3542_v33, %v3540_v40 }
 0x710   :  { %v2498_v41 = vpack.c.bf16 %v4434_v42, %v4434_v42 }
 0x712   :  { %2724 = vmatmul.mubr.bf16.vlgmr.msra.gmra.mxu0 %v2498_v41  ;;  %2765 = vmatmul.mubr.bf16.vlgmr.msra.gmra.mxu1 %v2498_v41 }
 0x713   :  { %3287 = vmatpush3.bf16.msra.mxu0 %v3423_v29  ;;  %3302 = vmatprep.mubr.bf16.mxu0 %v2814_v45 }
 0x714   :  { %3288 = vmatprep.subr.bf16.mxu0 %v3424_v43 }
 0x717   :  { %3289 = vmatpush3.bf16.msra.mxu0 %v3424_v43 }
 0x718   :  { %3290 = vmatprep.subr.bf16.mxu0 %v3425_v0 }
 0x71b   :  { %3291 = vmatpush3.bf16.msra.mxu0 %v3425_v0 }
 0x71c   :  { %3292 = vmatprep.subr.bf16.mxu0 %v3426_v47 }
 0x71f   :  { %3293 = vmatpush3.bf16.msra.mxu0 %v3426_v47 }
 0x720   :  { %3294 = vmatprep.subr.bf16.mxu0 %v3427_v11 }
 0x723   :  { %3295 = vmatpush3.bf16.msra.mxu0 %v3427_v11 }
 0x724   :  { %3296 = vmatprep.subr.bf16.mxu0 %v3428_v28 }
 0x727   :  { %3297 = vmatpush3.bf16.msra.mxu0 %v3428_v28 }
 0x728   :  { %3298 = vmatprep.subr.bf16.mxu0 %v3429_v48 }
 0x72b   :  { %3299 = vmatpush3.bf16.msra.mxu0 %v3429_v48 }
 0x72c   :  { %3300 = vmatprep.subr.bf16.mxu0 %v3430_v49 }
 0x72f   :  { %3301 = vmatpush3.bf16.msra.mxu0 %v3430_v49 }
 0x732   :  { %3303 = vmatmul.mubr.bf16.vlgmr.msra.gmra.mxu0 %v2815_v22 }
 0x733   :  { %3306 = vmatprep.mubr.bf16.mxu0 %v2816_v51 }
 0x7d2   :  { %v2725_v4 = vpop.f32.mrf.mxu0  ;;  %v2766_v31 = vpop.f32.mrf.mxu1 }
 0x7d3   :  { %v2773_v8 = vadd.f32 %v2725_v4, %v4542_v6  ;;  %v2775_v9 = vadd.f32 %v2766_v31, %v4543_v18 }
 0x7d4   :  { %v2727_v38 = vpop.f32.mrf.mxu0  ;;  %v2768_v1 = vpop.f32.mrf.mxu1 }
 0x7d5   :  { %v3262_v5 = vmul.f32 -1.442695, %v2773_v8  ;;  %v2774_v19 = vadd.f32 %v2727_v38, %v172_v52  ;;  %v3264_v29 = vmul.f32 -1.442695, %v2775_v9  ;;  %v2776_v13 = vadd.f32 %v2768_v1, %v4544_v50 }
 0x7d6   :  { %v2729_v26 = vpop.f32.mrf.mxu0  ;;  %v2770_v55 = vpop.f32.mrf.mxu1 }
 0x7d7   :  { %3543 = vpow2.f32 %v3262_v5  ;;  %v3263_v63 = vmul.f32 -1.442695, %v2774_v19 }
 0x7d8   :  { %v2730_v44 = vpop.f32.mrf.mxu0  ;;  %v2771_v36 = vpop.f32.mrf.mxu1 }
 0x7d9   :  { %3545 = vpow2.f32 %v3263_v63 }
 0x7da   :  { %3547 = vpow2.f32 %v3264_v29 }
 0x7db   :  { %3549 = vtanh.f32 %v2776_v13 }
 0x7e4   :  { %v3544_v54 = vpop.eup %3543 }
 0x7e5   :  { %v2786_v2 = vadd.f32 1.0, %v3544_v54 }
 0x7e6   :  { %v3546_v24 = vpop.eup %3545 }
 0x7e7   :  { %3551 = vrcp.f32 %v2786_v2  ;;  %v2787_v57 = vadd.f32 1.0, %v3546_v24  ;;  %v3548_v17 = vpop.eup %3547 }
 0x7e8   :  { %v3550_v59 = vpop.eup %3549  ;;  %v2788_v21 = vadd.f32 1.0, %v3548_v17 }
 0x7e9   :  { %3553 = vrcp.f32 %v2787_v57 }
 0x7ea   :  { %3555 = vrcp.f32 %v2788_v21 }
 0x7f2   :  { %v3304_v56 = vpop.f32.mrf.mxu0 }
 0x7f3   :  { %v2932_v20 = vadd.f32 %v3304_v56, %v3265_v10 }
 0x7f4   :  { %v3552_v60 = vpop.eup %3551  ;;  %v2923_v62 = vpop.f32.mrf.mxu0 }
 0x7f5   :  { %v2798_v25 = vmul.f32 %v3552_v60, %v3550_v59  ;;  %2956 = vst [vmem:[%s4505_s6 + $0x10] sm:$0xff] %v2932_v20  ;;  %v2924_v30 = vadd.f32 %v3265_v10, %v2923_v62 }
 0x7f6   :  { %v3554_v16 = vpop.eup %3553  ;;  %v3305_v23 = vpop.f32.mrf.mxu0 }
 0x7f7   :  { %v2797_v34 = vmul.f32 %v3554_v16, %v4431_v7  ;;  %2954 = vst [vmem:[%s4505_s6] sm:$0xff] %v2924_v30  ;;  %v2935_v35 = vadd.f32 %v3305_v23, %v3265_v10  ;;  %v3556_v58 = vpop.eup %3555 }
 0x7f8   :  { %v2926_v46 = vpop.f32.mrf.mxu0 }
 0x7f9   :  { %v2799_v53 = vadd.f32 %v2798_v25, %v2797_v34  ;;  %2957 = vst [vmem:[%s4505_s6 + $0x18] sm:$0xff] %v2935_v35  ;;  %v2927_v12 = vadd.f32 %v3265_v10, %v2926_v46 }
 0x7fb   :  { %3557 = vtanh.f32 %v2799_v53  ;;  %2955 = vst [vmem:[%s4505_s6 + $0x8] sm:$0xff] %v2927_v12 }
 0x808   :  { %v3558_v32 = vpop.eup %3557 }
 0x809   :  { %v2801_v3 = vmul.f32 %v3558_v32, %v3556_v58 }
 0x80b   :  { %v2817_v14 = vpack.c.bf16 %v2801_v3, %v4434_v42 }
 0x80d   :  { %3307 = vmatmul.mubr.bf16.gmra.mxu0 %v2817_v14 }
 0x8cd   :  { %v3308_v27 = vpop.f32.mrf.mxu0 }
 0x8ce   :  { %v2948_v61 = vadd.f32 %v3308_v27, %v3265_v10 }
 0x8cf   :  { %v2939_v15 = vpop.f32.mrf.mxu0 }
 0x8d0   :  { %2960 = vst [vmem:[%s4505_s6 + $0x30] sm:$0xff] %v2948_v61  ;;  %v2940_v37 = vadd.f32 %v3265_v10, %v2939_v15 }
 0x8d1   :  { %v3309_v39 = vpop.f32.mrf.mxu0 }
 0x8d2   :  { %2958 = vst [vmem:[%s4505_s6 + $0x20] sm:$0xff] %v2940_v37  ;;  %v2951_v7 = vadd.f32 %v3309_v39, %v3265_v10 }
 0x8d3   :  { %v2942_v40 = vpop.f32.mrf.mxu0 }
 0x8d4   :  { %2961 = vst [vmem:[%s4505_s6 + $0x38] sm:$0xff] %v2951_v7  ;;  %v2943_v33 = vadd.f32 %v3265_v10, %v2942_v40 }
 0x8d6   :  { %2959 = vst [vmem:[%s4505_s6 + $0x28] sm:$0xff] %v2943_v33 }

</bundles_post_ra>
